<compile_context>
chip_gen: v7x
topology: tpu7x:2x2x1
jax: 0.10.0
libtpu: 0.0.40
codegen_flags: <defaults>
</compile_context>

<pallas_src>
import math

import jax
import jax.numpy as jnp
from jax import lax
from jax.experimental import pallas as pl
from jax.experimental.pallas import tpu as pltpu

PATCH = 2          # patch_size = (2, 2), stride = (2, 2)
C_IN = 256
D_MODEL = 768


def embeddings_kernel(x_ref, w_ref, pos_ref, o_ref):
    """out = x @ W + (pos + bias), one row tile per grid step.

    x_ref  : (tile_r, K)   bf16 im2col'ed patches (rows = batch*seq, folded)
    w_ref  : (K, 768)      bf16 flattened conv weight (grid-invariant)
    pos_ref: (tile_r, 768) f32 position embeddings with conv bias folded in
    o_ref  : (tile_r, 768)
    """
    acc = jnp.dot(x_ref[...], w_ref[...],
                  preferred_element_type=jnp.float32)      # MXU, f32 accumulate
    o_ref[...] = (acc + pos_ref[...]).astype(o_ref.dtype)


def _choose_row_tiling(B, n_patches, row_cap=512):
    """Pick a row tile over the folded (B*n_patches) row axis.

    Returns (tile_r, mode):
      mode "A": tile_r is a multiple of n_patches (pos replicated -> resident)
      mode "B": tile_r divides n_patches (pos block = tile index % seq tiles)
    """
    R = B * n_patches
    if R <= row_cap:                         # tiny problem: one grid step
        return R, "A"
    if n_patches <= row_cap:
        for bb in range(B, 0, -1):           # whole batches per tile, <=512 rows
            if B % bb == 0:
                t = bb * n_patches
                if t <= row_cap and (t % 8 == 0 or t == R):
                    return t, "A"
    for t in (512, 256, 128, 64, 32, 16, 8):  # split the sequence axis
        if n_patches % t == 0:
            return t, "B"
    # TODO(synk): pathological n_patches (not a multiple of 8) falls back to a
    # single whole-array block; may exceed VMEM for very large inputs.
    return R, "A"


@jax.jit
def embeddings_forward(x, conv_w, conv_b, pos_emb):
    """x: (B, 256, H, W); conv_w: (768, 256, 2, 2); conv_b: (768,);
    pos_emb: (1, n_patches, 768) with n_patches = (H//2)*(W//2)."""
    B, C, H, W = x.shape
    hp, wp = H // PATCH, W // PATCH
    n_patches = hp * wp
    K = C * PATCH * PATCH                  # 1024
    D = conv_w.shape[0]                    # 768
    R = B * n_patches

    # im2col (patch p = i*wp + j, feature f = c*4 + kh*2 + kw), batch folded
    # into the row axis, cast to bf16 so the materialized intermediate is half
    # width.  TODO(synk): for very large B*n_patches, decompose the conv into
    # 4 accumulated matmuls over strided sub-views to skip this HBM round-trip.
    patches = (
        x.astype(jnp.bfloat16)
         .reshape(B, C, hp, PATCH, wp, PATCH)
         .transpose(0, 2, 4, 1, 3, 5)      # (B, hp, wp, C, kh, kw)
         .reshape(R, K)
    )
    w2 = conv_w.reshape(D, K).T.astype(jnp.bfloat16)   # (K, D), same (c,kh,kw) order
    # Fold the conv bias into the position embeddings (f32, once per call).
    pos_pb = (pos_emb.reshape(n_patches, D) + conv_b.reshape(1, D)).astype(jnp.float32)

    tile_r, mode = _choose_row_tiling(B, n_patches)
    grid = (R // tile_r,)

    if mode == "A":
        bb = tile_r // n_patches
        pos_arr = jnp.tile(pos_pb, (bb, 1))            # (tile_r, D), grid-invariant
        pos_spec = pl.BlockSpec((tile_r, D), lambda r: (0, 0))
    else:
        n_seq_tiles = n_patches // tile_r
        pos_arr = pos_pb                               # (n_patches, D)
        pos_spec = pl.BlockSpec((tile_r, D), lambda r: (r % n_seq_tiles, 0))

    out = pl.pallas_call(
        embeddings_kernel,
        out_shape=jax.ShapeDtypeStruct((R, D), x.dtype),
        grid_spec=pltpu.PrefetchScalarGridSpec(
            num_scalar_prefetch=0,
            grid=grid,
            in_specs=[
                pl.BlockSpec((tile_r, K), lambda r: (r, 0)),   # patches (bf16)
                pl.BlockSpec((K, D), lambda r: (0, 0)),        # weight (grid-invariant)
                pos_spec,                                      # pos + bias (f32)
            ],
            out_specs=pl.BlockSpec((tile_r, D), lambda r: (r, 0)),
        ),
        compiler_params=pltpu.CompilerParams(
            dimension_semantics=("parallel",),
        ),
    )(patches, w2, pos_arr)

    return out.reshape(B, n_patches, D)


if __name__ == "__main__":
    key = jax.random.PRNGKey(0)
    kx, kw, kb, kp = jax.random.split(key, 4)

    # img_size=(128,128): conv input spatial = 128 / 2**4 = 8,
    # n_patches = (8//2) * (8//2) = 16.
    B, H, W = 2, 8, 8
    n_patches = (H // PATCH) * (W // PATCH)

    x = jax.random.normal(kx, (B, C_IN, H, W), jnp.float32)

    # Conv2d default init bounds (uniform in +/- 1/sqrt(fan_in))
    fan_in = C_IN * PATCH * PATCH
    bound = 1.0 / math.sqrt(fan_in)
    conv_w = jax.random.uniform(kw, (D_MODEL, C_IN, PATCH, PATCH), jnp.float32,
                                -bound, bound)
    conv_b = jax.random.uniform(kb, (D_MODEL,), jnp.float32, -bound, bound)

    # The module initializes position_embeddings to zeros; use random values
    # here so the add path is actually exercised.
    pos_emb = 0.02 * jax.random.normal(kp, (1, n_patches, D_MODEL), jnp.float32)

    out = jax.block_until_ready(embeddings_forward(x, conv_w, conv_b, pos_emb))

    # Reference in plain JAX (eval-mode dropout == identity), full f32 conv.
    ref = lax.conv_general_dilated(
        x, conv_w, window_strides=(PATCH, PATCH), padding="VALID",
        dimension_numbers=("NCHW", "OIHW", "NCHW"))
    ref = ref + conv_b.reshape(1, D_MODEL, 1, 1)
    ref = ref.reshape(B, D_MODEL, n_patches).transpose(0, 2, 1) + pos_emb

    assert out.shape == (B, n_patches, D_MODEL)
    # bf16 matmul inputs with f32 accumulation => relaxed tolerance vs f32 ref.
    assert jnp.allclose(out, ref, atol=2e-2, rtol=2e-2)

    print("KERNEL_OK")
</pallas_src>

<mosaic_0001>
module attributes {stable_mosaic.version = 11 : i64} {
  func.func @embeddings_kernel(%arg0: i32, %arg1: memref<32x1024xbf16, #tpu.memory_space<vmem>>, %arg2: memref<1024x768xbf16, #tpu.memory_space<vmem>>, %arg3: memref<32x768xf32, #tpu.memory_space<vmem>>, %arg4: memref<32x768xf32, #tpu.memory_space<vmem>>) attributes {dimension_semantics = [#tpu.dimension_semantics<parallel>], iteration_bounds = array<i64: 1>, scalar_prefetch = 0 : i64, scratch_operands = 0 : i64, tpu.core_type = #tpu.core_type<tc>, window_params = [{transform_indices = @transform_0, window_bounds = array<i64: 32, 1024>}, {pipeline_mode = #tpu.pipeline_mode<synchronous>, transform_indices = @transform_1, window_bounds = array<i64: 1024, 768>}, {pipeline_mode = #tpu.pipeline_mode<synchronous>, transform_indices = @transform_2, window_bounds = array<i64: 32, 768>}, {transform_indices = @transform_3, window_bounds = array<i64: 32, 768>}]} {
    %c0 = arith.constant 0 : index
    %c0_0 = arith.constant 0 : index
    %0 = vector.load %arg1[%c0, %c0_0] : memref<32x1024xbf16, #tpu.memory_space<vmem>>, vector<32x1024xbf16>
    %c0_1 = arith.constant 0 : index
    %c0_2 = arith.constant 0 : index
    %1 = vector.load %arg2[%c0_1, %c0_2] : memref<1024x768xbf16, #tpu.memory_space<vmem>>, vector<1024x768xbf16>
    %cst = arith.constant dense<0.000000e+00> : vector<32x768xf32>
    %2 = tpu.matmul %0, %1, %cst {dimension_numbers = #tpu.dot_dimension_numbers<[1], [0], [0], [1], [0, 0, 1, 1], [], []>} : vector<32x1024xbf16>, vector<1024x768xbf16>, vector<32x768xf32> -> vector<32x768xf32>
    %c0_3 = arith.constant 0 : index
    %c0_4 = arith.constant 0 : index
    %3 = vector.load %arg3[%c0_3, %c0_4] : memref<32x768xf32, #tpu.memory_space<vmem>>, vector<32x768xf32>
    %4 = arith.addf %2, %3 : vector<32x768xf32>
    %c0_5 = arith.constant 0 : index
    %c0_6 = arith.constant 0 : index
    %5 = vector.load %arg4[%c0_5, %c0_6] : memref<32x768xf32, #tpu.memory_space<vmem>>, vector<32x768xf32>
    tpu.vector_store %arg4[%c0_5, %c0_6], %4 {strides = array<i32>} : memref<32x768xf32, #tpu.memory_space<vmem>>, vector<32x768xf32>,
    return
  }
  func.func @transform_0(%arg0: i32) -> (i32, i32) {
    %c0_i32 = arith.constant 0 : i32
    %c0_i32_0 = arith.constant 0 : i32
    return %arg0, %c0_i32 : i32, i32
  }
  func.func @transform_1(%arg0: i32) -> (i32, i32) {
    %c0_i32 = arith.constant 0 : i32
    %c0_i32_0 = arith.constant 0 : i32
    %c0_i32_1 = arith.constant 0 : i32
    return %c0_i32, %c0_i32_0 : i32, i32
  }
  func.func @transform_2(%arg0: i32) -> (i32, i32) {
    %c0_i32 = arith.constant 0 : i32
    %c0_i32_0 = arith.constant 0 : i32
    %c0_i32_1 = arith.constant 0 : i32
    return %c0_i32, %c0_i32_0 : i32, i32
  }
  func.func @transform_3(%arg0: i32) -> (i32, i32) {
    %c0_i32 = arith.constant 0 : i32
    %c0_i32_0 = arith.constant 0 : i32
    return %arg0, %c0_i32 : i32, i32
  }
}

</mosaic_0001>

<bundles_post_ra>
// kernel: embeddings_forward.1
= control target key start
LH: loop header
LB: loop body
LE: loop exit
PB: predicated region body
PF: predicated region fallthrough
CT: control target
= control target key end

     0   :  { %s5617_s0 = inlined_call_operand.vmem [shape: bf16[32,1024], index: 0, kind: input, shape index: {}]   ;;  %s5618_s1 = inlined_call_operand.vmem [shape: bf16[1024,768], index: 1, kind: input, shape index: {}]   ;;  %s5619_s2 = inlined_call_operand.vmem [shape: f32[32,768], index: 2, kind: input, shape index: {}]   ;;  %s5620_s3 = inlined_call_operand.hbm [shape: f32[32,768], index: 3, kind: output, shape index: {}]  }
   0x1   :  { %v3614_v0 = vld [vmem:[%s5618_s1 + $0x4] ss:$24 sps:$4 sm:$0xff]   ;;  %v3618_v2 = vld [vmem:[%s5618_s1] ss:$24 sps:$4 sm:$0xff]   ;;  %v3620_v4 = vld [vmem:[%s5618_s1 + $0x34] ss:$24 sps:$4 sm:$0xff]  }
   0x2   :  { %v3616_v1 = vld [vmem:[%s5618_s1 + $0x604] ss:$24 sps:$4 sm:$0xff]   ;;  %2439 = vmatprep.subr.bf16.mxu1 %v3614_v0  ;;  %v3619_v3 = vld [vmem:[%s5618_s1 + $0x600] ss:$24 sps:$4 sm:$0xff]   ;;  %v3622_v5 = vld [vmem:[%s5618_s1 + $0x634] ss:$24 sps:$4 sm:$0xff]  }
   0x3   :  { %2545 = vmatprep.subr.bf16.mxu0 %v3616_v1  ;;  %2440 = vmatpush1.bf16.msra.mxu1 %v3618_v2  ;;  %v3624_v6 = vld [vmem:[%s5618_s1 + $0x30] ss:$24 sps:$4 sm:$0xff]   ;;  %v3626_v8 = vld [vmem:[%s5618_s1 + $0x64] ss:$24 sps:$4 sm:$0xff]   ;;  %v3630_v10 = vld [vmem:[%s5618_s1 + $0x60] ss:$24 sps:$4 sm:$0xff]  }
   0x4   :  { %2546 = vmatpush1.bf16.msra.mxu0 %v3619_v3  ;;  %2441 = vmatprep.subr.bf16.mxu1 %v3620_v4  ;;  %v3625_v7 = vld [vmem:[%s5618_s1 + $0x630] ss:$24 sps:$4 sm:$0xff]   ;;  %v3628_v9 = vld [vmem:[%s5618_s1 + $0x664] ss:$24 sps:$4 sm:$0xff]   ;;  %v3631_v11 = vld [vmem:[%s5618_s1 + $0x660] ss:$24 sps:$4 sm:$0xff]  }
   0x5   :  { %2547 = vmatprep.subr.bf16.mxu0 %v3622_v5  ;;  %v3632_v12 = vld [vmem:[%s5618_s1 + $0x94] ss:$24 sps:$4 sm:$0xff]   ;;  %v3636_v14 = vld [vmem:[%s5618_s1 + $0x90] ss:$24 sps:$4 sm:$0xff]   ;;  %v3638_v16 = vld [vmem:[%s5618_s1 + $0xc4] ss:$24 sps:$4 sm:$0xff]  }
   0x6   :  { %v3634_v13 = vld [vmem:[%s5618_s1 + $0x694] ss:$24 sps:$4 sm:$0xff]   ;;  %v3637_v15 = vld [vmem:[%s5618_s1 + $0x690] ss:$24 sps:$4 sm:$0xff]   ;;  %v3640_v17 = vld [vmem:[%s5618_s1 + $0x6c4] ss:$24 sps:$4 sm:$0xff]  }
   0x7   :  { %2442 = vmatpush1.bf16.msra.mxu1 %v3624_v6  ;;  %v3642_v18 = vld [vmem:[%s5618_s1 + $0xc0] ss:$24 sps:$4 sm:$0xff]   ;;  %v3644_v20 = vld [vmem:[%s5618_s1 + $0xf4] ss:$24 sps:$4 sm:$0xff]   ;;  %v3648_v22 = vld [vmem:[%s5618_s1 + $0xf0] ss:$24 sps:$4 sm:$0xff]  }
   0x8   :  { %2548 = vmatpush1.bf16.msra.mxu0 %v3625_v7  ;;  %2443 = vmatprep.subr.bf16.mxu1 %v3626_v8  ;;  %v3643_v19 = vld [vmem:[%s5618_s1 + $0x6c0] ss:$24 sps:$4 sm:$0xff]   ;;  %v3646_v21 = vld [vmem:[%s5618_s1 + $0x6f4] ss:$24 sps:$4 sm:$0xff]   ;;  %v3649_v23 = vld [vmem:[%s5618_s1 + $0x6f0] ss:$24 sps:$4 sm:$0xff]  }
   0x9   :  { %2549 = vmatprep.subr.bf16.mxu0 %v3628_v9  ;;  %v3650_v24 = vld [vmem:[%s5618_s1 + $0x124] ss:$24 sps:$4 sm:$0xff]   ;;  %v3654_v26 = vld [vmem:[%s5618_s1 + $0x120] ss:$24 sps:$4 sm:$0xff]   ;;  %v3656_v28 = vld [vmem:[%s5618_s1 + $0x154] ss:$24 sps:$4 sm:$0xff]  }
   0xa   :  { %v3652_v25 = vld [vmem:[%s5618_s1 + $0x724] ss:$24 sps:$4 sm:$0xff]   ;;  %v3655_v27 = vld [vmem:[%s5618_s1 + $0x720] ss:$24 sps:$4 sm:$0xff]   ;;  %v3658_v29 = vld [vmem:[%s5618_s1 + $0x754] ss:$24 sps:$4 sm:$0xff]  }
   0xb   :  { %2444 = vmatpush1.bf16.msra.mxu1 %v3630_v10  ;;  %v3660_v30 = vld [vmem:[%s5618_s1 + $0x150] ss:$24 sps:$4 sm:$0xff]   ;;  %v3662_v32 = vld [vmem:[%s5618_s1 + $0x184] ss:$24 sps:$4 sm:$0xff]   ;;  %v3666_v34 = vld [vmem:[%s5618_s1 + $0x180] ss:$24 sps:$4 sm:$0xff]  }
   0xc   :  { %2550 = vmatpush1.bf16.msra.mxu0 %v3631_v11  ;;  %2445 = vmatprep.subr.bf16.mxu1 %v3632_v12  ;;  %v3661_v31 = vld [vmem:[%s5618_s1 + $0x750] ss:$24 sps:$4 sm:$0xff]   ;;  %v3664_v33 = vld [vmem:[%s5618_s1 + $0x784] ss:$24 sps:$4 sm:$0xff]   ;;  %v3667_v35 = vld [vmem:[%s5618_s1 + $0x780] ss:$24 sps:$4 sm:$0xff]  }
   0xd   :  { %2551 = vmatprep.subr.bf16.mxu0 %v3634_v13  ;;  %v3668_v36 = vld [vmem:[%s5618_s1 + $0x1b4] ss:$24 sps:$4 sm:$0xff]   ;;  %v3672_v38 = vld [vmem:[%s5618_s1 + $0x1b0] ss:$24 sps:$4 sm:$0xff]   ;;  %v3674_v40 = vld [vmem:[%s5618_s1 + $0x1e4] ss:$24 sps:$4 sm:$0xff]  }
   0xe   :  { %v3670_v37 = vld [vmem:[%s5618_s1 + $0x7b4] ss:$24 sps:$4 sm:$0xff]   ;;  %v3673_v39 = vld [vmem:[%s5618_s1 + $0x7b0] ss:$24 sps:$4 sm:$0xff]   ;;  %v3676_v41 = vld [vmem:[%s5618_s1 + $0x7e4] ss:$24 sps:$4 sm:$0xff]  }
   0xf   :  { %2446 = vmatpush1.bf16.msra.mxu1 %v3636_v14  ;;  %v3678_v42 = vld [vmem:[%s5618_s1 + $0x1e0] ss:$24 sps:$4 sm:$0xff]   ;;  %v3680_v44 = vld [vmem:[%s5618_s1 + $0x214] ss:$24 sps:$4 sm:$0xff]   ;;  %v3684_v46 = vld [vmem:[%s5618_s1 + $0x210] ss:$24 sps:$4 sm:$0xff]  }
  0x10   :  { %2552 = vmatpush1.bf16.msra.mxu0 %v3637_v15  ;;  %2447 = vmatprep.subr.bf16.mxu1 %v3638_v16  ;;  %v3679_v43 = vld [vmem:[%s5618_s1 + $0x7e0] ss:$24 sps:$4 sm:$0xff]   ;;  %v3682_v45 = vld [vmem:[%s5618_s1 + $0x814] ss:$24 sps:$4 sm:$0xff]   ;;  %v3685_v47 = vld [vmem:[%s5618_s1 + $0x810] ss:$24 sps:$4 sm:$0xff]  }
  0x11   :  { %2553 = vmatprep.subr.bf16.mxu0 %v3640_v17  ;;  %v15_v48 = vld [vmem:[%s5617_s0] sm:$0xff]  ;;  %v17_v53 = vld [vmem:[%s5617_s0 + $0x10] sm:$0xff] }
  0x12   :  { %v19_v49 = vld [vmem:[%s5617_s0 + $0x20] sm:$0xff]  ;;  %v21_v54 = vld [vmem:[%s5617_s0 + $0x30] sm:$0xff] }
  0x13   :  { %2448 = vmatpush1.bf16.msra.mxu1 %v3642_v18  ;;  %v3686_v50 = vld [vmem:[%s5618_s1 + $0x244] ss:$24 sps:$4 sm:$0xff]   ;;  %v4393_v52 = vcombine.high %v15_v48, %v19_v49  ;;  %v4402_v55 = vcombine.high %v17_v53, %v21_v54  ;;  %v3690_v56 = vld [vmem:[%s5618_s1 + $0x240] ss:$24 sps:$4 sm:$0xff]   ;;  %v3692_v58 = vld [vmem:[%s5618_s1 + $0x274] ss:$24 sps:$4 sm:$0xff]   ;;  %v4459_v10 = vcombine.low %v15_v48, %v19_v49  ;;  %v4461_v11 = vcombine.low %v17_v53, %v21_v54 }
  0x14   :  { %2554 = vmatpush1.bf16.msra.mxu0 %v3643_v19  ;;  %2449 = vmatprep.subr.bf16.mxu1 %v3644_v20  ;;  %v3688_v51 = vld [vmem:[%s5618_s1 + $0x844] ss:$24 sps:$4 sm:$0xff]   ;;  %v3691_v57 = vld [vmem:[%s5618_s1 + $0x840] ss:$24 sps:$4 sm:$0xff]   ;;  %v3694_v59 = vld [vmem:[%s5618_s1 + $0x874] ss:$24 sps:$4 sm:$0xff]  }
  0x15   :  { %2555 = vmatprep.subr.bf16.mxu0 %v3646_v21  ;;  %2471 = vmatprep.mubr.bf16.mxu1 %v4393_v52  ;;  %v3696_v60 = vld [vmem:[%s5618_s1 + $0x270] ss:$24 sps:$4 sm:$0xff]   ;;  %v3698_v62 = vld [vmem:[%s5618_s1 + $0x2a4] ss:$24 sps:$4 sm:$0xff]   ;;  %v3702_v0 = vld [vmem:[%s5618_s1 + $0x2a0] ss:$24 sps:$4 sm:$0xff]  }
  0x16   :  { %2577 = vmatprep.mubr.bf16.mxu0 %v4402_v55  ;;  %v3697_v61 = vld [vmem:[%s5618_s1 + $0x870] ss:$24 sps:$4 sm:$0xff]   ;;  %v3700_v63 = vld [vmem:[%s5618_s1 + $0x8a4] ss:$24 sps:$4 sm:$0xff]   ;;  %v3703_v1 = vld [vmem:[%s5618_s1 + $0x8a0] ss:$24 sps:$4 sm:$0xff]  }
  0x17   :  { %2450 = vmatpush1.bf16.msra.mxu1 %v3648_v22  ;;  %v3704_v2 = vld [vmem:[%s5618_s1 + $0x2d4] ss:$24 sps:$4 sm:$0xff]   ;;  %v3708_v4 = vld [vmem:[%s5618_s1 + $0x2d0] ss:$24 sps:$4 sm:$0xff]   ;;  %v3712_v6 = vld [vmem:[%s5618_s1 + $0x304] ss:$24 sps:$4 sm:$0xff]  }
  0x18   :  { %2556 = vmatpush1.bf16.msra.mxu0 %v3649_v23  ;;  %2451 = vmatprep.subr.bf16.mxu1 %v3650_v24  ;;  %v3706_v3 = vld [vmem:[%s5618_s1 + $0x8d4] ss:$24 sps:$4 sm:$0xff]   ;;  %v3709_v5 = vld [vmem:[%s5618_s1 + $0x8d0] ss:$24 sps:$4 sm:$0xff]   ;;  %v3715_v7 = vld [vmem:[%s5618_s1 + $0x904] ss:$24 sps:$4 sm:$0xff]  }
  0x19   :  { %2557 = vmatprep.subr.bf16.mxu0 %v3652_v25  ;;  %v3710_v8 = vld [vmem:[%s5618_s1 + $0x300] ss:$24 sps:$4 sm:$0xff]   ;;  %v3718_v12 = vld [vmem:[%s5618_s1 + $0x334] ss:$24 sps:$4 sm:$0xff]   ;;  %v3716_v14 = vld [vmem:[%s5618_s1 + $0x330] ss:$24 sps:$4 sm:$0xff]  }
  0x1a   :  { %v3713_v9 = vld [vmem:[%s5618_s1 + $0x900] ss:$24 sps:$4 sm:$0xff]   ;;  %v3721_v13 = vld [vmem:[%s5618_s1 + $0x934] ss:$24 sps:$4 sm:$0xff]   ;;  %v3719_v15 = vld [vmem:[%s5618_s1 + $0x930] ss:$24 sps:$4 sm:$0xff]  }
  0x1b   :  { %2452 = vmatpush1.bf16.msra.mxu1 %v3654_v26  ;;  %v3724_v16 = vld [vmem:[%s5618_s1 + $0x364] ss:$24 sps:$4 sm:$0xff]   ;;  %v3722_v18 = vld [vmem:[%s5618_s1 + $0x360] ss:$24 sps:$4 sm:$0xff]   ;;  %v3730_v20 = vld [vmem:[%s5618_s1 + $0x394] ss:$24 sps:$4 sm:$0xff]  }
  0x1c   :  { %2558 = vmatpush1.bf16.msra.mxu0 %v3655_v27  ;;  %2453 = vmatprep.subr.bf16.mxu1 %v3656_v28  ;;  %v3727_v17 = vld [vmem:[%s5618_s1 + $0x964] ss:$24 sps:$4 sm:$0xff]   ;;  %v3725_v19 = vld [vmem:[%s5618_s1 + $0x960] ss:$24 sps:$4 sm:$0xff]   ;;  %v3733_v21 = vld [vmem:[%s5618_s1 + $0x994] ss:$24 sps:$4 sm:$0xff]  }
  0x1d   :  { %2559 = vmatprep.subr.bf16.mxu0 %v3658_v29  ;;  %v3728_v22 = vld [vmem:[%s5618_s1 + $0x390] ss:$24 sps:$4 sm:$0xff]   ;;  %v3736_v24 = vld [vmem:[%s5618_s1 + $0x3c4] ss:$24 sps:$4 sm:$0xff]   ;;  %v3734_v26 = vld [vmem:[%s5618_s1 + $0x3c0] ss:$24 sps:$4 sm:$0xff]  }
  0x1e   :  { %v3731_v23 = vld [vmem:[%s5618_s1 + $0x990] ss:$24 sps:$4 sm:$0xff]   ;;  %v3739_v25 = vld [vmem:[%s5618_s1 + $0x9c4] ss:$24 sps:$4 sm:$0xff]   ;;  %v3737_v27 = vld [vmem:[%s5618_s1 + $0x9c0] ss:$24 sps:$4 sm:$0xff]  }
  0x1f   :  { %2454 = vmatpush1.bf16.msra.mxu1 %v3660_v30  ;;  %v3742_v28 = vld [vmem:[%s5618_s1 + $0x3f4] ss:$24 sps:$4 sm:$0xff]   ;;  %v23_v30 = vld [vmem:[%s5617_s0 + $0x40] sm:$0xff]  ;;  %v4580_v48 = vld [vmem:[%s5617_s0 + $0x18] sm:$0xff] }
  0x20   :  { %2560 = vmatpush1.bf16.msra.mxu0 %v3661_v31  ;;  %2455 = vmatprep.subr.bf16.mxu1 %v3662_v32  ;;  %v3745_v29 = vld [vmem:[%s5618_s1 + $0x9f4] ss:$24 sps:$4 sm:$0xff]   ;;  %v27_v31 = vld [vmem:[%s5617_s0 + $0x60] sm:$0xff]  ;;  %v3752_v53 = vld [vmem:[%s5618_s1 + $0x450] ss:$24 sps:$4 sm:$0xff]  }
  0x21   :  { %2561 = vmatprep.subr.bf16.mxu0 %v3664_v33  ;;  %v4525_v32 = vcombine.high %v23_v30, %v27_v31  ;;  %v25_v33 = vld [vmem:[%s5617_s0 + $0x50] sm:$0xff] }
  0x22   :  { %v3755_v54 = vld [vmem:[%s5618_s1 + $0xa50] ss:$24 sps:$4 sm:$0xff]  }
  0x23   :  { %2456 = vmatpush1.bf16.msra.mxu1 %v3666_v34  ;;  %v29_v34 = vld [vmem:[%s5617_s0 + $0x70] sm:$0xff] }
  0x24   :  { %2562 = vmatpush1.bf16.msra.mxu0 %v3667_v35  ;;  %2457 = vmatprep.subr.bf16.mxu1 %v3668_v36  ;;  %v3740_v35 = vld [vmem:[%s5618_s1 + $0x3f0] ss:$24 sps:$4 sm:$0xff]  }
  0x25   :  { %2563 = vmatprep.subr.bf16.mxu0 %v3670_v37  ;;  %v3743_v36 = vld [vmem:[%s5618_s1 + $0x9f0] ss:$24 sps:$4 sm:$0xff]   ;;  %v4539_v37 = vcombine.high %v25_v33, %v29_v34 }
  0x27   :  { %2458 = vmatpush1.bf16.msra.mxu1 %v3672_v38  ;;  %v4541_v38 = vcombine.low %v23_v30, %v27_v31  ;;  %v24_v30 = vld [vmem:[%s5617_s0 + $0x48] sm:$0xff] }
  0x28   :  { %2564 = vmatpush1.bf16.msra.mxu0 %v3673_v39  ;;  %2459 = vmatprep.subr.bf16.mxu1 %v3674_v40  ;;  %v4543_v39 = vcombine.low %v25_v33, %v29_v34  ;;  %v3748_v40 = vld [vmem:[%s5618_s1 + $0x424] ss:$24 sps:$4 sm:$0xff]   ;;  %v28_v31 = vld [vmem:[%s5617_s0 + $0x68] sm:$0xff] }
  0x29   :  { %2565 = vmatprep.subr.bf16.mxu0 %v3676_v41  ;;  %v3751_v41 = vld [vmem:[%s5618_s1 + $0xa24] ss:$24 sps:$4 sm:$0xff]  }
  0x2b   :  { %2460 = vmatpush1.bf16.msra.mxu1 %v3678_v42  ;;  %v3746_v42 = vld [vmem:[%s5618_s1 + $0x420] ss:$24 sps:$4 sm:$0xff]  }
  0x2c   :  { %2566 = vmatpush1.bf16.msra.mxu0 %v3679_v43  ;;  %2461 = vmatprep.subr.bf16.mxu1 %v3680_v44  ;;  %v3749_v43 = vld [vmem:[%s5618_s1 + $0xa20] ss:$24 sps:$4 sm:$0xff]   ;;  %v3754_v44 = vld [vmem:[%s5618_s1 + $0x454] ss:$24 sps:$4 sm:$0xff]  }
  0x2d   :  { %2567 = vmatprep.subr.bf16.mxu0 %v3682_v45  ;;  %v3757_v45 = vld [vmem:[%s5618_s1 + $0xa54] ss:$24 sps:$4 sm:$0xff]  }
  0x2f   :  { %2462 = vmatpush1.bf16.msra.mxu1 %v3684_v46  ;;  %v4570_v46 = vld [vmem:[%s5617_s0 + $0x8] sm:$0xff] }
  0x30   :  { %2568 = vmatpush1.bf16.msra.mxu0 %v3685_v47  ;;  %2463 = vmatprep.subr.bf16.mxu1 %v3686_v50  ;;  %v4575_v47 = vld [vmem:[%s5617_s0 + $0x28] sm:$0xff]  ;;  %v4589_v50 = vld [vmem:[%s5617_s0 + $0x38] sm:$0xff] }
  0x31   :  { %2569 = vmatprep.subr.bf16.mxu0 %v3688_v51  ;;  %v4584_v49 = vcombine.high %v4570_v46, %v4575_v47  ;;  %v4593_v51 = vcombine.high %v4580_v48, %v4589_v50  ;;  %v4719_v33 = vcombine.low %v4570_v46, %v4575_v47  ;;  %v4723_v34 = vcombine.low %v4580_v48, %v4589_v50  ;;  %v3820_v46 = vld [vmem:[%s5618_s1 + $0x6c] ss:$24 sps:$4 sm:$0xff]  }
  0x32   :  { %v3823_v47 = vld [vmem:[%s5618_s1 + $0x74] ss:$24 sps:$4 sm:$0xff]   ;;  %v4757_v48 = vcombine.low %v24_v30, %v28_v31 }
  0x33   :  { %2464 = vmatpush1.bf16.msra.mxu1 %v3690_v56  ;;  %v3760_v56 = vld [vmem:[%s5618_s1 + $0x484] ss:$24 sps:$4 sm:$0xff]  }
  0x34   :  { %2570 = vmatpush1.bf16.msra.mxu0 %v3691_v57  ;;  %2465 = vmatprep.subr.bf16.mxu1 %v3692_v58  ;;  %v3763_v57 = vld [vmem:[%s5618_s1 + $0xa84] ss:$24 sps:$4 sm:$0xff]   ;;  %v3758_v58 = vld [vmem:[%s5618_s1 + $0x480] ss:$24 sps:$4 sm:$0xff]  }
  0x35   :  { %2571 = vmatprep.subr.bf16.mxu0 %v3694_v59  ;;  %v3761_v59 = vld [vmem:[%s5618_s1 + $0xa80] ss:$24 sps:$4 sm:$0xff]  }
  0x37   :  { %2466 = vmatpush1.bf16.msra.mxu1 %v3696_v60  ;;  %v3766_v60 = vld [vmem:[%s5618_s1 + $0x4b4] ss:$24 sps:$4 sm:$0xff]  }
  0x38   :  { %2572 = vmatpush1.bf16.msra.mxu0 %v3697_v61  ;;  %2467 = vmatprep.subr.bf16.mxu1 %v3698_v62  ;;  %v3769_v61 = vld [vmem:[%s5618_s1 + $0xab4] ss:$24 sps:$4 sm:$0xff]   ;;  %v3764_v62 = vld [vmem:[%s5618_s1 + $0x4b0] ss:$24 sps:$4 sm:$0xff]  }
  0x39   :  { %2573 = vmatprep.subr.bf16.mxu0 %v3700_v63  ;;  %v3767_v63 = vld [vmem:[%s5618_s1 + $0xab0] ss:$24 sps:$4 sm:$0xff]  }
  0x3b   :  { %2468 = vmatpush1.bf16.msra.mxu1 %v3702_v0  ;;  %v3772_v0 = vld [vmem:[%s5618_s1 + $0x4e4] ss:$24 sps:$4 sm:$0xff]  }
  0x3c   :  { %2574 = vmatpush1.bf16.msra.mxu0 %v3703_v1  ;;  %2469 = vmatprep.subr.bf16.mxu1 %v3704_v2  ;;  %v3775_v1 = vld [vmem:[%s5618_s1 + $0xae4] ss:$24 sps:$4 sm:$0xff]   ;;  %v3770_v2 = vld [vmem:[%s5618_s1 + $0x4e0] ss:$24 sps:$4 sm:$0xff]  }
  0x3d   :  { %2575 = vmatprep.subr.bf16.mxu0 %v3706_v3  ;;  %v3773_v3 = vld [vmem:[%s5618_s1 + $0xae0] ss:$24 sps:$4 sm:$0xff]  }
  0x3f   :  { %2470 = vmatpush1.bf16.msra.mxu1 %v3708_v4  ;;  %v3778_v4 = vld [vmem:[%s5618_s1 + $0x514] ss:$24 sps:$4 sm:$0xff]  }
  0x40   :  { %2576 = vmatpush1.bf16.msra.mxu0 %v3709_v5  ;;  %2492 = vmatprep.subr.bf16.mxu1 %v3712_v6  ;;  %v3781_v5 = vld [vmem:[%s5618_s1 + $0xb14] ss:$24 sps:$4 sm:$0xff]   ;;  %v3776_v6 = vld [vmem:[%s5618_s1 + $0x510] ss:$24 sps:$4 sm:$0xff]  }
  0x41   :  { %2598 = vmatprep.subr.bf16.mxu0 %v3715_v7  ;;  %v3779_v7 = vld [vmem:[%s5618_s1 + $0xb10] ss:$24 sps:$4 sm:$0xff]  }
  0x42   :  { %2472 = vmatmul.mubr.bf16.vlgmr.msra.gmra.mrb[0].mxu1 %v4459_v10 }
  0x43   :  { %2578 = vmatmul.mubr.bf16.vlgmr.msra.gmra.mrb[0].mxu0 %v4461_v11  ;;  %2493 = vmatpush1.bf16.msra.mxu1 %v3710_v8  ;;  %v3784_v8 = vld [vmem:[%s5618_s1 + $0x544] ss:$24 sps:$4 sm:$0xff]  }
  0x44   :  { %2599 = vmatpush1.bf16.msra.mxu0 %v3713_v9  ;;  %2494 = vmatprep.subr.bf16.mxu1 %v3718_v12  ;;  %v3787_v9 = vld [vmem:[%s5618_s1 + $0xb44] ss:$24 sps:$4 sm:$0xff]   ;;  %v3782_v12 = vld [vmem:[%s5618_s1 + $0x540] ss:$24 sps:$4 sm:$0xff]  }
  0x45   :  { %2600 = vmatprep.subr.bf16.mxu0 %v3721_v13  ;;  %2481 = vmatprep.mubr.bf16.mxu1 %v4525_v32  ;;  %v3785_v13 = vld [vmem:[%s5618_s1 + $0xb40] ss:$24 sps:$4 sm:$0xff]  }
  0x46   :  { %2587 = vmatprep.mubr.bf16.mxu0 %v4539_v37 }
  0x47   :  { %2495 = vmatpush1.bf16.msra.mxu1 %v3716_v14  ;;  %v3790_v14 = vld [vmem:[%s5618_s1 + $0x574] ss:$24 sps:$4 sm:$0xff]  }
  0x48   :  { %2601 = vmatpush1.bf16.msra.mxu0 %v3719_v15  ;;  %2496 = vmatprep.subr.bf16.mxu1 %v3724_v16  ;;  %v3793_v15 = vld [vmem:[%s5618_s1 + $0xb74] ss:$24 sps:$4 sm:$0xff]   ;;  %v3788_v16 = vld [vmem:[%s5618_s1 + $0x570] ss:$24 sps:$4 sm:$0xff]  }
  0x49   :  { %2602 = vmatprep.subr.bf16.mxu0 %v3727_v17  ;;  %v3791_v17 = vld [vmem:[%s5618_s1 + $0xb70] ss:$24 sps:$4 sm:$0xff]  }
  0x4a   :  { %2482 = vmatmul.mubr.bf16.gmra.mrb[4].mxu1 %v4541_v38 }
  0x4b   :  { %2497 = vmatpush1.bf16.msra.mxu1 %v3722_v18  ;;  %2588 = vmatmul.mubr.bf16.gmra.mrb[4].mxu0 %v4543_v39  ;;  %v3796_v18 = vld [vmem:[%s5618_s1 + $0x5a4] ss:$24 sps:$4 sm:$0xff]  }
  0x4c   :  { %2603 = vmatpush1.bf16.msra.mxu0 %v3725_v19  ;;  %2498 = vmatprep.subr.bf16.mxu1 %v3730_v20  ;;  %v3799_v19 = vld [vmem:[%s5618_s1 + $0xba4] ss:$24 sps:$4 sm:$0xff]   ;;  %v3794_v20 = vld [vmem:[%s5618_s1 + $0x5a0] ss:$24 sps:$4 sm:$0xff]  }
  0x4d   :  { %2604 = vmatprep.subr.bf16.mxu0 %v3733_v21  ;;  %2524 = vmatprep.mubr.bf16.mxu1 %v4584_v49  ;;  %v3797_v21 = vld [vmem:[%s5618_s1 + $0xba0] ss:$24 sps:$4 sm:$0xff]  }
  0x4e   :  { %2630 = vmatprep.mubr.bf16.mxu0 %v4593_v51 }
  0x4f   :  { %2499 = vmatpush1.bf16.msra.mxu1 %v3728_v22  ;;  %v3802_v22 = vld [vmem:[%s5618_s1 + $0x5d4] ss:$24 sps:$4 sm:$0xff]  }
  0x50   :  { %2605 = vmatpush1.bf16.msra.mxu0 %v3731_v23  ;;  %2500 = vmatprep.subr.bf16.mxu1 %v3736_v24  ;;  %v3805_v23 = vld [vmem:[%s5618_s1 + $0xbd4] ss:$24 sps:$4 sm:$0xff]   ;;  %v3800_v24 = vld [vmem:[%s5618_s1 + $0x5d0] ss:$24 sps:$4 sm:$0xff]  }
  0x51   :  { %2606 = vmatprep.subr.bf16.mxu0 %v3739_v25  ;;  %v3803_v25 = vld [vmem:[%s5618_s1 + $0xbd0] ss:$24 sps:$4 sm:$0xff]  }
  0x53   :  { %2501 = vmatpush1.bf16.msra.mxu1 %v3734_v26  ;;  %v3808_v26 = vld [vmem:[%s5618_s1 + $0xc] ss:$24 sps:$4 sm:$0xff]  }
  0x54   :  { %2607 = vmatpush1.bf16.msra.mxu0 %v3737_v27  ;;  %2502 = vmatprep.subr.bf16.mxu1 %v3742_v28  ;;  %v3811_v27 = vld [vmem:[%s5618_s1 + $0x14] ss:$24 sps:$4 sm:$0xff]   ;;  %v3806_v28 = vld [vmem:[%s5618_s1 + $0x8] ss:$24 sps:$4 sm:$0xff]  }
  0x55   :  { %2608 = vmatprep.subr.bf16.mxu0 %v3745_v29  ;;  %v3809_v29 = vld [vmem:[%s5618_s1 + $0x10] ss:$24 sps:$4 sm:$0xff]  }
  0x57   :  { %2503 = vmatpush1.bf16.msra.mxu1 %v3740_v35  ;;  %v26_v35 = vld [vmem:[%s5617_s0 + $0x58] sm:$0xff] }
  0x58   :  { %2609 = vmatpush1.bf16.msra.mxu0 %v3743_v36  ;;  %2504 = vmatprep.subr.bf16.mxu1 %v3748_v40  ;;  %v30_v36 = vld [vmem:[%s5617_s0 + $0x78] sm:$0xff] }
  0x59   :  { %2610 = vmatprep.subr.bf16.mxu0 %v3751_v41  ;;  %v3814_v40 = vld [vmem:[%s5618_s1 + $0x3c] ss:$24 sps:$4 sm:$0xff]   ;;  %v4759_v50 = vcombine.low %v26_v35, %v30_v36 }
  0x5a   :  { %v3817_v41 = vld [vmem:[%s5618_s1 + $0x44] ss:$24 sps:$4 sm:$0xff]  }
  0x5b   :  { %2505 = vmatpush1.bf16.msra.mxu1 %v3746_v42  ;;  %v4737_v42 = vcombine.high %v24_v30, %v28_v31  ;;  %v3883_v30 = vld [vmem:[%s5618_s1 + $0x254] ss:$24 sps:$4 sm:$0xff]   ;;  %v3878_v31 = vld [vmem:[%s5618_s1 + $0x248] ss:$24 sps:$4 sm:$0xff]  }
  0x5c   :  { %2611 = vmatpush1.bf16.msra.mxu0 %v3749_v43  ;;  %2506 = vmatprep.subr.bf16.mxu1 %v3754_v44  ;;  %v4739_v43 = vcombine.high %v26_v35, %v30_v36  ;;  %v3812_v44 = vld [vmem:[%s5618_s1 + $0x38] ss:$24 sps:$4 sm:$0xff]   ;;  %v3886_v36 = vld [vmem:[%s5618_s1 + $0x27c] ss:$24 sps:$4 sm:$0xff]  }
  0x5d   :  { %2612 = vmatprep.subr.bf16.mxu0 %v3757_v45  ;;  %v3815_v45 = vld [vmem:[%s5618_s1 + $0x40] ss:$24 sps:$4 sm:$0xff]   ;;  %v3881_v35 = vld [vmem:[%s5618_s1 + $0x250] ss:$24 sps:$4 sm:$0xff]  }
  0x5f   :  { %2507 = vmatpush1.bf16.msra.mxu1 %v3752_v53  ;;  %v3818_v53 = vld [vmem:[%s5618_s1 + $0x68] ss:$24 sps:$4 sm:$0xff]  }
  0x60   :  { %2613 = vmatpush1.bf16.msra.mxu0 %v3755_v54  ;;  %2508 = vmatprep.subr.bf16.mxu1 %v3760_v56  ;;  %v3821_v54 = vld [vmem:[%s5618_s1 + $0x70] ss:$24 sps:$4 sm:$0xff]   ;;  %v3826_v56 = vld [vmem:[%s5618_s1 + $0x9c] ss:$24 sps:$4 sm:$0xff]  }
  0x61   :  { %2614 = vmatprep.subr.bf16.mxu0 %v3763_v57  ;;  %v3829_v57 = vld [vmem:[%s5618_s1 + $0xa4] ss:$24 sps:$4 sm:$0xff]  }
  0x63   :  { %2509 = vmatpush1.bf16.msra.mxu1 %v3758_v58  ;;  %v3824_v58 = vld [vmem:[%s5618_s1 + $0x98] ss:$24 sps:$4 sm:$0xff]  }
  0x64   :  { %2615 = vmatpush1.bf16.msra.mxu0 %v3761_v59  ;;  %2510 = vmatprep.subr.bf16.mxu1 %v3766_v60  ;;  %v3827_v59 = vld [vmem:[%s5618_s1 + $0xa0] ss:$24 sps:$4 sm:$0xff]   ;;  %v3832_v60 = vld [vmem:[%s5618_s1 + $0xcc] ss:$24 sps:$4 sm:$0xff]  }
  0x65   :  { %2616 = vmatprep.subr.bf16.mxu0 %v3769_v61  ;;  %v3835_v61 = vld [vmem:[%s5618_s1 + $0xd4] ss:$24 sps:$4 sm:$0xff]  }
  0x67   :  { %2511 = vmatpush1.bf16.msra.mxu1 %v3764_v62  ;;  %v3830_v62 = vld [vmem:[%s5618_s1 + $0xc8] ss:$24 sps:$4 sm:$0xff]  }
  0x68   :  { %2617 = vmatpush1.bf16.msra.mxu0 %v3767_v63  ;;  %2512 = vmatprep.subr.bf16.mxu1 %v3772_v0  ;;  %v3833_v63 = vld [vmem:[%s5618_s1 + $0xd0] ss:$24 sps:$4 sm:$0xff]   ;;  %v3838_v0 = vld [vmem:[%s5618_s1 + $0xfc] ss:$24 sps:$4 sm:$0xff]  }
  0x69   :  { %2618 = vmatprep.subr.bf16.mxu0 %v3775_v1  ;;  %v3836_v1 = vld [vmem:[%s5618_s1 + $0xf8] ss:$24 sps:$4 sm:$0xff]  }
  0x6b   :  { %2513 = vmatpush1.bf16.msra.mxu1 %v3770_v2  ;;  %v3839_v2 = vld [vmem:[%s5618_s1 + $0x100] ss:$24 sps:$4 sm:$0xff]  }
  0x6c   :  { %2619 = vmatpush1.bf16.msra.mxu0 %v3773_v3  ;;  %2514 = vmatprep.subr.bf16.mxu1 %v3778_v4  ;;  %v3844_v3 = vld [vmem:[%s5618_s1 + $0x12c] ss:$24 sps:$4 sm:$0xff]  }
  0x6d   :  { %2620 = vmatprep.subr.bf16.mxu0 %v3781_v5  ;;  %v3847_v4 = vld [vmem:[%s5618_s1 + $0x134] ss:$24 sps:$4 sm:$0xff]   ;;  %v3842_v5 = vld [vmem:[%s5618_s1 + $0x128] ss:$24 sps:$4 sm:$0xff]  }
  0x6f   :  { %2515 = vmatpush1.bf16.msra.mxu1 %v3776_v6  ;;  %v3845_v6 = vld [vmem:[%s5618_s1 + $0x130] ss:$24 sps:$4 sm:$0xff]  }
  0x70   :  { %2621 = vmatpush1.bf16.msra.mxu0 %v3779_v7  ;;  %2516 = vmatprep.subr.bf16.mxu1 %v3784_v8  ;;  %v3850_v7 = vld [vmem:[%s5618_s1 + $0x15c] ss:$24 sps:$4 sm:$0xff]  }
  0x71   :  { %2622 = vmatprep.subr.bf16.mxu0 %v3787_v9  ;;  %v3853_v8 = vld [vmem:[%s5618_s1 + $0x164] ss:$24 sps:$4 sm:$0xff]   ;;  %v3848_v9 = vld [vmem:[%s5618_s1 + $0x158] ss:$24 sps:$4 sm:$0xff]  }
  0x73   :  { %2517 = vmatpush1.bf16.msra.mxu1 %v3782_v12  ;;  %v3851_v12 = vld [vmem:[%s5618_s1 + $0x160] ss:$24 sps:$4 sm:$0xff]  }
  0x74   :  { %2623 = vmatpush1.bf16.msra.mxu0 %v3785_v13  ;;  %2518 = vmatprep.subr.bf16.mxu1 %v3790_v14  ;;  %v3856_v13 = vld [vmem:[%s5618_s1 + $0x18c] ss:$24 sps:$4 sm:$0xff]  }
  0x75   :  { %2624 = vmatprep.subr.bf16.mxu0 %v3793_v15  ;;  %v3859_v14 = vld [vmem:[%s5618_s1 + $0x194] ss:$24 sps:$4 sm:$0xff]   ;;  %v3854_v15 = vld [vmem:[%s5618_s1 + $0x188] ss:$24 sps:$4 sm:$0xff]  }
  0x77   :  { %2519 = vmatpush1.bf16.msra.mxu1 %v3788_v16  ;;  %v3857_v16 = vld [vmem:[%s5618_s1 + $0x190] ss:$24 sps:$4 sm:$0xff]  }
  0x78   :  { %2625 = vmatpush1.bf16.msra.mxu0 %v3791_v17  ;;  %2520 = vmatprep.subr.bf16.mxu1 %v3796_v18  ;;  %v3862_v17 = vld [vmem:[%s5618_s1 + $0x1bc] ss:$24 sps:$4 sm:$0xff]  }
  0x79   :  { %2626 = vmatprep.subr.bf16.mxu0 %v3799_v19  ;;  %v3865_v18 = vld [vmem:[%s5618_s1 + $0x1c4] ss:$24 sps:$4 sm:$0xff]   ;;  %v3860_v19 = vld [vmem:[%s5618_s1 + $0x1b8] ss:$24 sps:$4 sm:$0xff]  }
  0x7b   :  { %2521 = vmatpush1.bf16.msra.mxu1 %v3794_v20  ;;  %v3863_v20 = vld [vmem:[%s5618_s1 + $0x1c0] ss:$24 sps:$4 sm:$0xff]  }
  0x7c   :  { %2627 = vmatpush1.bf16.msra.mxu0 %v3797_v21  ;;  %2522 = vmatprep.subr.bf16.mxu1 %v3802_v22  ;;  %v3868_v21 = vld [vmem:[%s5618_s1 + $0x1ec] ss:$24 sps:$4 sm:$0xff]  }
  0x7d   :  { %2628 = vmatprep.subr.bf16.mxu0 %v3805_v23  ;;  %v3871_v22 = vld [vmem:[%s5618_s1 + $0x1f4] ss:$24 sps:$4 sm:$0xff]   ;;  %v3866_v23 = vld [vmem:[%s5618_s1 + $0x1e8] ss:$24 sps:$4 sm:$0xff]  }
  0x7f   :  { %2523 = vmatpush1.bf16.msra.mxu1 %v3800_v24  ;;  %v3869_v24 = vld [vmem:[%s5618_s1 + $0x1f0] ss:$24 sps:$4 sm:$0xff]  }
  0x80   :  { %2629 = vmatpush1.bf16.msra.mxu0 %v3803_v25  ;;  %2651 = vmatprep.subr.bf16.mxu1 %v3808_v26  ;;  %v3874_v25 = vld [vmem:[%s5618_s1 + $0x21c] ss:$24 sps:$4 sm:$0xff]  }
  0x81   :  { %2863 = vmatprep.subr.bf16.mxu0 %v3811_v27  ;;  %v3877_v26 = vld [vmem:[%s5618_s1 + $0x224] ss:$24 sps:$4 sm:$0xff]   ;;  %v3872_v27 = vld [vmem:[%s5618_s1 + $0x218] ss:$24 sps:$4 sm:$0xff]  }
  0x82   :  { %2525 = vmatmul.mubr.bf16.vlgmr.msra.gmra.mrb[0].mxu1 %v4719_v33 }
  0x83   :  { %2631 = vmatmul.mubr.bf16.vlgmr.msra.gmra.mrb[0].mxu0 %v4723_v34  ;;  %2652 = vmatpush1.bf16.msra.mxu1 %v3806_v28  ;;  %v3875_v28 = vld [vmem:[%s5618_s1 + $0x220] ss:$24 sps:$4 sm:$0xff]  }
  0x84   :  { %2864 = vmatpush1.bf16.msra.mxu0 %v3809_v29  ;;  %2653 = vmatprep.subr.bf16.mxu1 %v3814_v40  ;;  %v3880_v29 = vld [vmem:[%s5618_s1 + $0x24c] ss:$24 sps:$4 sm:$0xff]  }
  0x85   :  { %2865 = vmatprep.subr.bf16.mxu0 %v3817_v41  ;;  %2534 = vmatprep.mubr.bf16.mxu1 %v4737_v42  ;;  %v3889_v40 = vld [vmem:[%s5618_s1 + $0x284] ss:$24 sps:$4 sm:$0xff]   ;;  %v3884_v41 = vld [vmem:[%s5618_s1 + $0x278] ss:$24 sps:$4 sm:$0xff]  }
  0x86   :  { %2640 = vmatprep.mubr.bf16.mxu0 %v4739_v43 }
  0x87   :  { %2654 = vmatpush1.bf16.msra.mxu1 %v3812_v44  ;;  %v3887_v44 = vld [vmem:[%s5618_s1 + $0x280] ss:$24 sps:$4 sm:$0xff]  }
  0x88   :  { %2866 = vmatpush1.bf16.msra.mxu0 %v3815_v45  ;;  %2655 = vmatprep.subr.bf16.mxu1 %v3820_v46  ;;  %v3892_v45 = vld [vmem:[%s5618_s1 + $0x2ac] ss:$24 sps:$4 sm:$0xff]  }
  0x89   :  { %2867 = vmatprep.subr.bf16.mxu0 %v3823_v47  ;;  %v3895_v46 = vld [vmem:[%s5618_s1 + $0x2b4] ss:$24 sps:$4 sm:$0xff]   ;;  %v3890_v47 = vld [vmem:[%s5618_s1 + $0x2a8] ss:$24 sps:$4 sm:$0xff]  }
  0x8a   :  { %2535 = vmatmul.mubr.bf16.gmra.mrb[4].mxu1 %v4757_v48 }
  0x8b   :  { %2641 = vmatmul.mubr.bf16.gmra.mrb[4].mxu0 %v4759_v50  ;;  %2656 = vmatpush1.bf16.msra.mxu1 %v3818_v53  ;;  %v3893_v53 = vld [vmem:[%s5618_s1 + $0x2b0] ss:$24 sps:$4 sm:$0xff]  }
  0x8c   :  { %2868 = vmatpush1.bf16.msra.mxu0 %v3821_v54  ;;  %2657 = vmatprep.subr.bf16.mxu1 %v3826_v56  ;;  %v3898_v54 = vld [vmem:[%s5618_s1 + $0x2dc] ss:$24 sps:$4 sm:$0xff]  }
  0x8d   :  { %2869 = vmatprep.subr.bf16.mxu0 %v3829_v57  ;;  %2683 = vmatprep.mubr.bf16.mxu1 %v4393_v52  ;;  %v3901_v56 = vld [vmem:[%s5618_s1 + $0x2e4] ss:$24 sps:$4 sm:$0xff]   ;;  %v3896_v57 = vld [vmem:[%s5618_s1 + $0x2d8] ss:$24 sps:$4 sm:$0xff]  }
  0x8e   :  { %2895 = vmatprep.mubr.bf16.mxu0 %v4393_v52  ;;  %v3841_v52 = vld [vmem:[%s5618_s1 + $0x104] ss:$24 sps:$4 sm:$0xff]  }
  0x8f   :  { %2658 = vmatpush1.bf16.msra.mxu1 %v3824_v58  ;;  %v3899_v58 = vld [vmem:[%s5618_s1 + $0x2e0] ss:$24 sps:$4 sm:$0xff]  }
  0x90   :  { %2870 = vmatpush1.bf16.msra.mxu0 %v3827_v59  ;;  %2659 = vmatprep.subr.bf16.mxu1 %v3832_v60  ;;  %v3904_v59 = vld [vmem:[%s5618_s1 + $0x30c] ss:$24 sps:$4 sm:$0xff]  }
  0x91   :  { %2871 = vmatprep.subr.bf16.mxu0 %v3835_v61  ;;  %v3907_v60 = vld [vmem:[%s5618_s1 + $0x314] ss:$24 sps:$4 sm:$0xff]   ;;  %v3902_v61 = vld [vmem:[%s5618_s1 + $0x308] ss:$24 sps:$4 sm:$0xff]  }
  0x93   :  { %2660 = vmatpush1.bf16.msra.mxu1 %v3830_v62  ;;  %v3905_v62 = vld [vmem:[%s5618_s1 + $0x310] ss:$24 sps:$4 sm:$0xff]  }
  0x94   :  { %2872 = vmatpush1.bf16.msra.mxu0 %v3833_v63  ;;  %2661 = vmatprep.subr.bf16.mxu1 %v3838_v0  ;;  %v3910_v63 = vld [vmem:[%s5618_s1 + $0x33c] ss:$24 sps:$4 sm:$0xff]  }
  0x95   :  { %2873 = vmatprep.subr.bf16.mxu0 %v3841_v52  ;;  %v3913_v0 = vld [vmem:[%s5618_s1 + $0x344] ss:$24 sps:$4 sm:$0xff]   ;;  %v3908_v52 = vld [vmem:[%s5618_s1 + $0x338] ss:$24 sps:$4 sm:$0xff]  }
  0x97   :  { %2662 = vmatpush1.bf16.msra.mxu1 %v3836_v1  ;;  %v3911_v1 = vld [vmem:[%s5618_s1 + $0x340] ss:$24 sps:$4 sm:$0xff]  }
  0x98   :  { %2874 = vmatpush1.bf16.msra.mxu0 %v3839_v2  ;;  %2663 = vmatprep.subr.bf16.mxu1 %v3844_v3  ;;  %v3916_v2 = vld [vmem:[%s5618_s1 + $0x36c] ss:$24 sps:$4 sm:$0xff]   ;;  %v3914_v3 = vld [vmem:[%s5618_s1 + $0x368] ss:$24 sps:$4 sm:$0xff]  }
  0x99   :  { %2875 = vmatprep.subr.bf16.mxu0 %v3847_v4  ;;  %v3917_v4 = vld [vmem:[%s5618_s1 + $0x370] ss:$24 sps:$4 sm:$0xff]  }
  0x9b   :  { %2664 = vmatpush1.bf16.msra.mxu1 %v3842_v5  ;;  %v3922_v5 = vld [vmem:[%s5618_s1 + $0x39c] ss:$24 sps:$4 sm:$0xff]  }
  0x9c   :  { %2876 = vmatpush1.bf16.msra.mxu0 %v3845_v6  ;;  %2665 = vmatprep.subr.bf16.mxu1 %v3850_v7  ;;  %v3920_v6 = vld [vmem:[%s5618_s1 + $0x398] ss:$24 sps:$4 sm:$0xff]  }
  0x9d   :  { %2877 = vmatprep.subr.bf16.mxu0 %v3853_v8  ;;  %v3923_v7 = vld [vmem:[%s5618_s1 + $0x3a0] ss:$24 sps:$4 sm:$0xff]   ;;  %v3928_v8 = vld [vmem:[%s5618_s1 + $0x3cc] ss:$24 sps:$4 sm:$0xff]  }
  0x9f   :  { %2666 = vmatpush1.bf16.msra.mxu1 %v3848_v9  ;;  %v3931_v9 = vld [vmem:[%s5618_s1 + $0x3d4] ss:$24 sps:$4 sm:$0xff]  }
  0xa0   :  { %2878 = vmatpush1.bf16.msra.mxu0 %v3851_v12  ;;  %2667 = vmatprep.subr.bf16.mxu1 %v3856_v13  ;;  %v3929_v12 = vld [vmem:[%s5618_s1 + $0x3d0] ss:$24 sps:$4 sm:$0xff]   ;;  %v3934_v13 = vld [vmem:[%s5618_s1 + $0x3fc] ss:$24 sps:$4 sm:$0xff]  }
  0xa1   :  { %2879 = vmatprep.subr.bf16.mxu0 %v3859_v14  ;;  %v3932_v14 = vld [vmem:[%s5618_s1 + $0x3f8] ss:$24 sps:$4 sm:$0xff]  }
  0xa3   :  { %2668 = vmatpush1.bf16.msra.mxu1 %v3854_v15  ;;  %v3935_v15 = vld [vmem:[%s5618_s1 + $0x400] ss:$24 sps:$4 sm:$0xff]  }
  0xa4   :  { %2880 = vmatpush1.bf16.msra.mxu0 %v3857_v16  ;;  %2669 = vmatprep.subr.bf16.mxu1 %v3862_v17  ;;  %v3940_v16 = vld [vmem:[%s5618_s1 + $0x42c] ss:$24 sps:$4 sm:$0xff]  }
  0xa5   :  { %2881 = vmatprep.subr.bf16.mxu0 %v3865_v18  ;;  %v3943_v17 = vld [vmem:[%s5618_s1 + $0x434] ss:$24 sps:$4 sm:$0xff]   ;;  %v3938_v18 = vld [vmem:[%s5618_s1 + $0x428] ss:$24 sps:$4 sm:$0xff]  }
  0xa7   :  { %2670 = vmatpush1.bf16.msra.mxu1 %v3860_v19  ;;  %v3941_v19 = vld [vmem:[%s5618_s1 + $0x430] ss:$24 sps:$4 sm:$0xff]  }
  0xa8   :  { %2882 = vmatpush1.bf16.msra.mxu0 %v3863_v20  ;;  %2671 = vmatprep.subr.bf16.mxu1 %v3868_v21  ;;  %v3946_v20 = vld [vmem:[%s5618_s1 + $0x45c] ss:$24 sps:$4 sm:$0xff]  }
  0xa9   :  { %2883 = vmatprep.subr.bf16.mxu0 %v3871_v22  ;;  %v3949_v21 = vld [vmem:[%s5618_s1 + $0x464] ss:$24 sps:$4 sm:$0xff]   ;;  %v3944_v22 = vld [vmem:[%s5618_s1 + $0x458] ss:$24 sps:$4 sm:$0xff]  }
  0xab   :  { %2672 = vmatpush1.bf16.msra.mxu1 %v3866_v23  ;;  %v3947_v23 = vld [vmem:[%s5618_s1 + $0x460] ss:$24 sps:$4 sm:$0xff]  }
  0xac   :  { %2884 = vmatpush1.bf16.msra.mxu0 %v3869_v24  ;;  %2673 = vmatprep.subr.bf16.mxu1 %v3874_v25  ;;  %v3952_v24 = vld [vmem:[%s5618_s1 + $0x48c] ss:$24 sps:$4 sm:$0xff]  }
  0xad   :  { %2885 = vmatprep.subr.bf16.mxu0 %v3877_v26  ;;  %v3955_v25 = vld [vmem:[%s5618_s1 + $0x494] ss:$24 sps:$4 sm:$0xff]   ;;  %v3950_v26 = vld [vmem:[%s5618_s1 + $0x488] ss:$24 sps:$4 sm:$0xff]  }
  0xaf   :  { %2674 = vmatpush1.bf16.msra.mxu1 %v3872_v27  ;;  %v3953_v27 = vld [vmem:[%s5618_s1 + $0x490] ss:$24 sps:$4 sm:$0xff]  }
  0xb0   :  { %2886 = vmatpush1.bf16.msra.mxu0 %v3875_v28  ;;  %2675 = vmatprep.subr.bf16.mxu1 %v3880_v29  ;;  %v3958_v28 = vld [vmem:[%s5618_s1 + $0x4bc] ss:$24 sps:$4 sm:$0xff]  }
  0xb1   :  { %2887 = vmatprep.subr.bf16.mxu0 %v3883_v30  ;;  %v3961_v29 = vld [vmem:[%s5618_s1 + $0x4c4] ss:$24 sps:$4 sm:$0xff]   ;;  %v3956_v30 = vld [vmem:[%s5618_s1 + $0x4b8] ss:$24 sps:$4 sm:$0xff]  }
  0xb3   :  { %2676 = vmatpush1.bf16.msra.mxu1 %v3878_v31  ;;  %v3959_v31 = vld [vmem:[%s5618_s1 + $0x4c0] ss:$24 sps:$4 sm:$0xff]  }
  0xb4   :  { %2888 = vmatpush1.bf16.msra.mxu0 %v3881_v35  ;;  %2677 = vmatprep.subr.bf16.mxu1 %v3886_v36  ;;  %v3964_v35 = vld [vmem:[%s5618_s1 + $0x4ec] ss:$24 sps:$4 sm:$0xff]  }
  0xb5   :  { %2889 = vmatprep.subr.bf16.mxu0 %v3889_v40  ;;  %v3967_v36 = vld [vmem:[%s5618_s1 + $0x4f4] ss:$24 sps:$4 sm:$0xff]   ;;  %v3962_v40 = vld [vmem:[%s5618_s1 + $0x4e8] ss:$24 sps:$4 sm:$0xff]  }
  0xb7   :  { %2678 = vmatpush1.bf16.msra.mxu1 %v3884_v41  ;;  %v3965_v41 = vld [vmem:[%s5618_s1 + $0x4f0] ss:$24 sps:$4 sm:$0xff]  }
  0xb8   :  { %2890 = vmatpush1.bf16.msra.mxu0 %v3887_v44  ;;  %2679 = vmatprep.subr.bf16.mxu1 %v3892_v45  ;;  %v3970_v44 = vld [vmem:[%s5618_s1 + $0x51c] ss:$24 sps:$4 sm:$0xff]  }
  0xb9   :  { %2891 = vmatprep.subr.bf16.mxu0 %v3895_v46  ;;  %v3973_v45 = vld [vmem:[%s5618_s1 + $0x524] ss:$24 sps:$4 sm:$0xff]   ;;  %v3968_v46 = vld [vmem:[%s5618_s1 + $0x518] ss:$24 sps:$4 sm:$0xff]  }
  0xbb   :  { %2680 = vmatpush1.bf16.msra.mxu1 %v3890_v47  ;;  %v3971_v47 = vld [vmem:[%s5618_s1 + $0x520] ss:$24 sps:$4 sm:$0xff]  }
  0xbc   :  { %2892 = vmatpush1.bf16.msra.mxu0 %v3893_v53  ;;  %2681 = vmatprep.subr.bf16.mxu1 %v3898_v54  ;;  %v3976_v53 = vld [vmem:[%s5618_s1 + $0x54c] ss:$24 sps:$4 sm:$0xff]  }
  0xbd   :  { %2893 = vmatprep.subr.bf16.mxu0 %v3901_v56  ;;  %v3979_v54 = vld [vmem:[%s5618_s1 + $0x554] ss:$24 sps:$4 sm:$0xff]   ;;  %v3974_v56 = vld [vmem:[%s5618_s1 + $0x548] ss:$24 sps:$4 sm:$0xff]  }
  0xbf   :  { %2682 = vmatpush1.bf16.msra.mxu1 %v3896_v57  ;;  %v3977_v57 = vld [vmem:[%s5618_s1 + $0x550] ss:$24 sps:$4 sm:$0xff]  }
  0xc0   :  { %2894 = vmatpush1.bf16.msra.mxu0 %v3899_v58  ;;  %2704 = vmatprep.subr.bf16.mxu1 %v3904_v59  ;;  %v3982_v58 = vld [vmem:[%s5618_s1 + $0x57c] ss:$24 sps:$4 sm:$0xff]  }
  0xc1   :  { %2916 = vmatprep.subr.bf16.mxu0 %v3907_v60  ;;  %v3985_v59 = vld [vmem:[%s5618_s1 + $0x584] ss:$24 sps:$4 sm:$0xff]   ;;  %v3980_v60 = vld [vmem:[%s5618_s1 + $0x578] ss:$24 sps:$4 sm:$0xff]  }
  0xc2   :  { %2684 = vmatmul.mubr.bf16.vlgmr.msra.gmra.mrb[8].mxu1 %v4459_v10 }
  0xc3   :  { %2896 = vmatmul.mubr.bf16.vlgmr.msra.gmra.mrb[8].mxu0 %v4459_v10  ;;  %2705 = vmatpush1.bf16.msra.mxu1 %v3902_v61  ;;  %v3919_v10 = vld [vmem:[%s5618_s1 + $0x374] ss:$24 sps:$4 sm:$0xff]   ;;  %v3983_v61 = vld [vmem:[%s5618_s1 + $0x580] ss:$24 sps:$4 sm:$0xff]  }
  0xc4   :  { %2917 = vmatpush1.bf16.msra.mxu0 %v3905_v62  ;;  %2706 = vmatprep.subr.bf16.mxu1 %v3910_v63  ;;  %v3988_v62 = vld [vmem:[%s5618_s1 + $0x5ac] ss:$24 sps:$4 sm:$0xff]  }
  0xc5   :  { %2918 = vmatprep.subr.bf16.mxu0 %v3913_v0  ;;  %2693 = vmatprep.mubr.bf16.mxu1 %v4525_v32  ;;  %v3991_v63 = vld [vmem:[%s5618_s1 + $0x5b4] ss:$24 sps:$4 sm:$0xff]   ;;  %v3986_v0 = vld [vmem:[%s5618_s1 + $0x5a8] ss:$24 sps:$4 sm:$0xff]  }
  0xc6   :  { %2905 = vmatprep.mubr.bf16.mxu0 %v4525_v32  ;;  %v3925_v32 = vld [vmem:[%s5618_s1 + $0x3a4] ss:$24 sps:$4 sm:$0xff]  }
  0xc7   :  { %2707 = vmatpush1.bf16.msra.mxu1 %v3908_v52  ;;  %v3989_v52 = vld [vmem:[%s5618_s1 + $0x5b0] ss:$24 sps:$4 sm:$0xff]  }
  0xc8   :  { %2919 = vmatpush1.bf16.msra.mxu0 %v3911_v1  ;;  %2708 = vmatprep.subr.bf16.mxu1 %v3916_v2  ;;  %v3994_v1 = vld [vmem:[%s5618_s1 + $0x5dc] ss:$24 sps:$4 sm:$0xff]  }
  0xc9   :  { %2920 = vmatprep.subr.bf16.mxu0 %v3919_v10  ;;  %v3997_v2 = vld [vmem:[%s5618_s1 + $0x5e4] ss:$24 sps:$4 sm:$0xff]   ;;  %v3992_v10 = vld [vmem:[%s5618_s1 + $0x5d8] ss:$24 sps:$4 sm:$0xff]  }
  0xca   :  { %2694 = vmatmul.mubr.bf16.gmra.mrb[12].mxu1 %v4541_v38 }
  0xcb   :  { %2906 = vmatmul.mubr.bf16.gmra.mrb[12].mxu0 %v4541_v38  ;;  %2709 = vmatpush1.bf16.msra.mxu1 %v3914_v3  ;;  %v3926_v38 = vld [vmem:[%s5618_s1 + $0x3c8] ss:$24 sps:$4 sm:$0xff]  }
  0xcc   :  { %2921 = vmatpush1.bf16.msra.mxu0 %v3917_v4  ;;  %2710 = vmatprep.subr.bf16.mxu1 %v3922_v5  ;;  %v3995_v3 = vld [vmem:[%s5618_s1 + $0x5e0] ss:$24 sps:$4 sm:$0xff]   ;;  %v4000_v4 = vld [vmem:[%s5618_s1 + $0x60c] ss:$24 sps:$4 sm:$0xff]  }
  0xcd   :  { %2922 = vmatprep.subr.bf16.mxu0 %v3925_v32  ;;  %2736 = vmatprep.mubr.bf16.mxu1 %v4584_v49  ;;  %v4003_v5 = vld [vmem:[%s5618_s1 + $0x614] ss:$24 sps:$4 sm:$0xff]   ;;  %v3998_v32 = vld [vmem:[%s5618_s1 + $0x608] ss:$24 sps:$4 sm:$0xff]  }
  0xce   :  { %2948 = vmatprep.mubr.bf16.mxu0 %v4584_v49  ;;  %v3937_v49 = vld [vmem:[%s5618_s1 + $0x404] ss:$24 sps:$4 sm:$0xff]  }
  0xcf   :  { %2711 = vmatpush1.bf16.msra.mxu1 %v3920_v6  ;;  %v4001_v6 = vld [vmem:[%s5618_s1 + $0x610] ss:$24 sps:$4 sm:$0xff]  }
  0xd0   :  { %2923 = vmatpush1.bf16.msra.mxu0 %v3923_v7  ;;  %2712 = vmatprep.subr.bf16.mxu1 %v3928_v8  ;;  %v4006_v7 = vld [vmem:[%s5618_s1 + $0x63c] ss:$24 sps:$4 sm:$0xff]  }
  0xd1   :  { %2924 = vmatprep.subr.bf16.mxu0 %v3931_v9  ;;  %v4009_v8 = vld [vmem:[%s5618_s1 + $0x644] ss:$24 sps:$4 sm:$0xff]   ;;  %v4004_v9 = vld [vmem:[%s5618_s1 + $0x638] ss:$24 sps:$4 sm:$0xff]  }
  0xd3   :  { %2713 = vmatpush1.bf16.msra.mxu1 %v3926_v38  ;;  %v4007_v38 = vld [vmem:[%s5618_s1 + $0x640] ss:$24 sps:$4 sm:$0xff]  }
  0xd4   :  { %2925 = vmatpush1.bf16.msra.mxu0 %v3929_v12  ;;  %2714 = vmatprep.subr.bf16.mxu1 %v3934_v13  ;;  %v4012_v12 = vld [vmem:[%s5618_s1 + $0x66c] ss:$24 sps:$4 sm:$0xff]   ;;  %v4010_v13 = vld [vmem:[%s5618_s1 + $0x668] ss:$24 sps:$4 sm:$0xff]  }
  0xd5   :  { %2926 = vmatprep.subr.bf16.mxu0 %v3937_v49  ;;  %v4013_v49 = vld [vmem:[%s5618_s1 + $0x670] ss:$24 sps:$4 sm:$0xff]  }
  0xd7   :  { %2715 = vmatpush1.bf16.msra.mxu1 %v3932_v14 }
  0xd8   :  { %2927 = vmatpush1.bf16.msra.mxu0 %v3935_v15  ;;  %2716 = vmatprep.subr.bf16.mxu1 %v3940_v16 }
  0xd9   :  { %2928 = vmatprep.subr.bf16.mxu0 %v3943_v17 }
  0xdb   :  { %2717 = vmatpush1.bf16.msra.mxu1 %v3938_v18 }
  0xdc   :  { %2929 = vmatpush1.bf16.msra.mxu0 %v3941_v19  ;;  %2718 = vmatprep.subr.bf16.mxu1 %v3946_v20 }
  0xdd   :  { %2930 = vmatprep.subr.bf16.mxu0 %v3949_v21 }
  0xdf   :  { %2719 = vmatpush1.bf16.msra.mxu1 %v3944_v22 }
  0xe0   :  { %2931 = vmatpush1.bf16.msra.mxu0 %v3947_v23  ;;  %2720 = vmatprep.subr.bf16.mxu1 %v3952_v24 }
  0xe1   :  { %2932 = vmatprep.subr.bf16.mxu0 %v3955_v25 }
  0xe3   :  { %2721 = vmatpush1.bf16.msra.mxu1 %v3950_v26 }
  0xe4   :  { %2933 = vmatpush1.bf16.msra.mxu0 %v3953_v27  ;;  %2722 = vmatprep.subr.bf16.mxu1 %v3958_v28 }
  0xe5   :  { %2934 = vmatprep.subr.bf16.mxu0 %v3961_v29 }
  0xe7   :  { %2723 = vmatpush1.bf16.msra.mxu1 %v3956_v30 }
  0xe8   :  { %2935 = vmatpush1.bf16.msra.mxu0 %v3959_v31  ;;  %2724 = vmatprep.subr.bf16.mxu1 %v3964_v35 }
  0xe9   :  { %2936 = vmatprep.subr.bf16.mxu0 %v3967_v36 }
  0xeb   :  { %2725 = vmatpush1.bf16.msra.mxu1 %v3962_v40 }
  0xec   :  { %2937 = vmatpush1.bf16.msra.mxu0 %v3965_v41  ;;  %2726 = vmatprep.subr.bf16.mxu1 %v3970_v44 }
  0xed   :  { %2938 = vmatprep.subr.bf16.mxu0 %v3973_v45 }
  0xef   :  { %2727 = vmatpush1.bf16.msra.mxu1 %v3968_v46 }
  0xf0   :  { %2939 = vmatpush1.bf16.msra.mxu0 %v3971_v47  ;;  %2728 = vmatprep.subr.bf16.mxu1 %v3976_v53 }
  0xf1   :  { %2940 = vmatprep.subr.bf16.mxu0 %v3979_v54 }
  0xf3   :  { %2729 = vmatpush1.bf16.msra.mxu1 %v3974_v56 }
  0xf4   :  { %2941 = vmatpush1.bf16.msra.mxu0 %v3977_v57  ;;  %2730 = vmatprep.subr.bf16.mxu1 %v3982_v58 }
  0xf5   :  { %2942 = vmatprep.subr.bf16.mxu0 %v3985_v59 }
  0xf7   :  { %2731 = vmatpush1.bf16.msra.mxu1 %v3980_v60 }
  0xf8   :  { %2943 = vmatpush1.bf16.msra.mxu0 %v3983_v61  ;;  %2732 = vmatprep.subr.bf16.mxu1 %v3988_v62 }
  0xf9   :  { %2944 = vmatprep.subr.bf16.mxu0 %v3991_v63 }
  0xfb   :  { %2733 = vmatpush1.bf16.msra.mxu1 %v3986_v0 }
  0xfc   :  { %2945 = vmatpush1.bf16.msra.mxu0 %v3989_v52  ;;  %2734 = vmatprep.subr.bf16.mxu1 %v3994_v1 }
  0xfd   :  { %2946 = vmatprep.subr.bf16.mxu0 %v3997_v2 }
  0xff   :  { %2735 = vmatpush1.bf16.msra.mxu1 %v3992_v10 }
 0x100   :  { %2947 = vmatpush1.bf16.msra.mxu0 %v3995_v3  ;;  %2757 = vmatprep.subr.bf16.mxu1 %v4000_v4 }
 0x101   :  { %2969 = vmatprep.subr.bf16.mxu0 %v4003_v5 }
 0x102   :  { %2737 = vmatmul.mubr.bf16.vlgmr.msra.gmra.mrb[8].mxu1 %v4719_v33 }
 0x103   :  { %2949 = vmatmul.mubr.bf16.vlgmr.msra.gmra.mrb[8].mxu0 %v4719_v33  ;;  %2758 = vmatpush1.bf16.msra.mxu1 %v3998_v32  ;;  %v4015_v33 = vld [vmem:[%s5618_s1 + $0x674] ss:$24 sps:$4 sm:$0xff]  }
 0x104   :  { %2970 = vmatpush1.bf16.msra.mxu0 %v4001_v6  ;;  %2759 = vmatprep.subr.bf16.mxu1 %v4006_v7 }
 0x105   :  { %2971 = vmatprep.subr.bf16.mxu0 %v4009_v8  ;;  %2746 = vmatprep.mubr.bf16.mxu1 %v4737_v42 }
 0x106   :  { %2958 = vmatprep.mubr.bf16.mxu0 %v4737_v42 }
 0x107   :  { %2760 = vmatpush1.bf16.msra.mxu1 %v4004_v9 }
 0x108   :  { %2972 = vmatpush1.bf16.msra.mxu0 %v4007_v38 }
 0x109   :  { %8 = vsyncpa [#allocation3], 0  ;;  %2761 = vmatprep.subr.bf16.mxu1 %v4012_v12  ;;  %2973 = vmatprep.subr.bf16.mxu0 %v4015_v33  ;;  %v4018_v14 = vld [vmem:[%s5618_s1 + $0x69c] ss:$24 sps:$4 sm:$0xff]   ;;  %v4016_v15 = vld [vmem:[%s5618_s1 + $0x698] ss:$24 sps:$4 sm:$0xff]  }
 0x10a   :  { %v4021_v42 = vld [vmem:[%s5618_s1 + $0x6a4] ss:$24 sps:$4 sm:$0xff]   ;;  %2747 = vmatmul.mubr.bf16.gmra.mrb[12].mxu1 %v4757_v48  ;;  %v4019_v16 = vld [vmem:[%s5618_s1 + $0x6a0] ss:$24 sps:$4 sm:$0xff]   ;;  %v4025_v19 = vld [vmem:[%s5618_s1 + $0x6d0] ss:$24 sps:$4 sm:$0xff]  }
 0x10b   :  { %2959 = vmatmul.mubr.bf16.gmra.mrb[12].mxu0 %v4757_v48  ;;  %2762 = vmatpush1.bf16.msra.mxu1 %v4010_v13  ;;  %v4024_v17 = vld [vmem:[%s5618_s1 + $0x6cc] ss:$24 sps:$4 sm:$0xff]   ;;  %v4022_v18 = vld [vmem:[%s5618_s1 + $0x6c8] ss:$24 sps:$4 sm:$0xff]   ;;  %v4030_v20 = vld [vmem:[%s5618_s1 + $0x6fc] ss:$24 sps:$4 sm:$0xff]  }
 0x10c   :  { %2974 = vmatpush1.bf16.msra.mxu0 %v4013_v49  ;;  %2763 = vmatprep.subr.bf16.mxu1 %v4018_v14  ;;  %v4027_v48 = vld [vmem:[%s5618_s1 + $0x6d4] ss:$24 sps:$4 sm:$0xff]   ;;  %v4028_v21 = vld [vmem:[%s5618_s1 + $0x6f8] ss:$24 sps:$4 sm:$0xff]   ;;  %v4034_v25 = vld [vmem:[%s5618_s1 + $0x728] ss:$24 sps:$4 sm:$0xff]  }
 0x10d   :  { %2975 = vmatprep.subr.bf16.mxu0 %v4021_v42  ;;  %2789 = vmatprep.mubr.bf16.mxu1 %v4402_v55  ;;  %v4031_v22 = vld [vmem:[%s5618_s1 + $0x700] ss:$24 sps:$4 sm:$0xff]   ;;  %v4036_v23 = vld [vmem:[%s5618_s1 + $0x72c] ss:$24 sps:$4 sm:$0xff]   ;;  %v4037_v26 = vld [vmem:[%s5618_s1 + $0x730] ss:$24 sps:$4 sm:$0xff]  }
 0x10e   :  { %3001 = vmatprep.mubr.bf16.mxu0 %v4402_v55  ;;  %v4033_v55 = vld [vmem:[%s5618_s1 + $0x704] ss:$24 sps:$4 sm:$0xff]   ;;  %v4039_v24 = vld [vmem:[%s5618_s1 + $0x734] ss:$24 sps:$4 sm:$0xff]   ;;  %v4040_v29 = vld [vmem:[%s5618_s1 + $0x758] ss:$24 sps:$4 sm:$0xff]  }
 0x10f   :  { %2764 = vmatpush1.bf16.msra.mxu1 %v4016_v15  ;;  %v4042_v27 = vld [vmem:[%s5618_s1 + $0x75c] ss:$24 sps:$4 sm:$0xff]   ;;  %v4043_v30 = vld [vmem:[%s5618_s1 + $0x760] ss:$24 sps:$4 sm:$0xff]   ;;  %v4048_v31 = vld [vmem:[%s5618_s1 + $0x78c] ss:$24 sps:$4 sm:$0xff]  }
 0x110   :  { %2976 = vmatpush1.bf16.msra.mxu0 %v4019_v16  ;;  %2765 = vmatprep.subr.bf16.mxu1 %v4024_v17  ;;  %v4045_v28 = vld [vmem:[%s5618_s1 + $0x764] ss:$24 sps:$4 sm:$0xff]   ;;  %v4051_v35 = vld [vmem:[%s5618_s1 + $0x794] ss:$24 sps:$4 sm:$0xff]   ;;  %v4046_v36 = vld [vmem:[%s5618_s1 + $0x788] ss:$24 sps:$4 sm:$0xff]  }
 0x111   :  { %2977 = vmatprep.subr.bf16.mxu0 %v4027_v48  ;;  %v4049_v40 = vld [vmem:[%s5618_s1 + $0x790] ss:$24 sps:$4 sm:$0xff]   ;;  %v4054_v41 = vld [vmem:[%s5618_s1 + $0x7bc] ss:$24 sps:$4 sm:$0xff]   ;;  %v4055_v46 = vld [vmem:[%s5618_s1 + $0x7c0] ss:$24 sps:$4 sm:$0xff]  }
 0x112   :  { %v4057_v44 = vld [vmem:[%s5618_s1 + $0x7c4] ss:$24 sps:$4 sm:$0xff]   ;;  %v4052_v45 = vld [vmem:[%s5618_s1 + $0x7b8] ss:$24 sps:$4 sm:$0xff]   ;;  %v4063_v53 = vld [vmem:[%s5618_s1 + $0x7f4] ss:$24 sps:$4 sm:$0xff]  }
 0x113   :  { %2766 = vmatpush1.bf16.msra.mxu1 %v4022_v18  ;;  %v4060_v47 = vld [vmem:[%s5618_s1 + $0x7ec] ss:$24 sps:$4 sm:$0xff]   ;;  %v4058_v54 = vld [vmem:[%s5618_s1 + $0x7e8] ss:$24 sps:$4 sm:$0xff]   ;;  %v4066_v57 = vld [vmem:[%s5618_s1 + $0x81c] ss:$24 sps:$4 sm:$0xff]  }
 0x114   :  { %2978 = vmatpush1.bf16.msra.mxu0 %v4025_v19  ;;  %2767 = vmatprep.subr.bf16.mxu1 %v4030_v20  ;;  %v4061_v56 = vld [vmem:[%s5618_s1 + $0x7f0] ss:$24 sps:$4 sm:$0xff]   ;;  %v4069_v58 = vld [vmem:[%s5618_s1 + $0x824] ss:$24 sps:$4 sm:$0xff]   ;;  %v4067_v60 = vld [vmem:[%s5618_s1 + $0x820] ss:$24 sps:$4 sm:$0xff]  }
 0x115   :  { %2979 = vmatprep.subr.bf16.mxu0 %v4033_v55  ;;  %v4064_v59 = vld [vmem:[%s5618_s1 + $0x818] ss:$24 sps:$4 sm:$0xff]   ;;  %v4072_v61 = vld [vmem:[%s5618_s1 + $0x84c] ss:$24 sps:$4 sm:$0xff]   ;;  %v4070_v63 = vld [vmem:[%s5618_s1 + $0x848] ss:$24 sps:$4 sm:$0xff]  }
 0x116   :  { %v4075_v62 = vld [vmem:[%s5618_s1 + $0x854] ss:$24 sps:$4 sm:$0xff]   ;;  %v4073_v0 = vld [vmem:[%s5618_s1 + $0x850] ss:$24 sps:$4 sm:$0xff]   ;;  %v4081_v1 = vld [vmem:[%s5618_s1 + $0x884] ss:$24 sps:$4 sm:$0xff]  }
 0x117   :  { %2768 = vmatpush1.bf16.msra.mxu1 %v4028_v21  ;;  %v4078_v52 = vld [vmem:[%s5618_s1 + $0x87c] ss:$24 sps:$4 sm:$0xff]   ;;  %v4076_v2 = vld [vmem:[%s5618_s1 + $0x878] ss:$24 sps:$4 sm:$0xff]   ;;  %v4084_v3 = vld [vmem:[%s5618_s1 + $0x8ac] ss:$24 sps:$4 sm:$0xff]  }
 0x118   :  { %2980 = vmatpush1.bf16.msra.mxu0 %v4031_v22  ;;  %2769 = vmatprep.subr.bf16.mxu1 %v4036_v23  ;;  %v4079_v10 = vld [vmem:[%s5618_s1 + $0x880] ss:$24 sps:$4 sm:$0xff]   ;;  %v4087_v4 = vld [vmem:[%s5618_s1 + $0x8b4] ss:$24 sps:$4 sm:$0xff]   ;;  %v4085_v32 = vld [vmem:[%s5618_s1 + $0x8b0] ss:$24 sps:$4 sm:$0xff]  }
 0x119   :  { %2981 = vmatprep.subr.bf16.mxu0 %v4039_v24  ;;  %v4082_v5 = vld [vmem:[%s5618_s1 + $0x8a8] ss:$24 sps:$4 sm:$0xff]   ;;  %v4090_v6 = vld [vmem:[%s5618_s1 + $0x8dc] ss:$24 sps:$4 sm:$0xff]   ;;  %v4088_v8 = vld [vmem:[%s5618_s1 + $0x8d8] ss:$24 sps:$4 sm:$0xff]  }
 0x11a   :  { %v4093_v7 = vld [vmem:[%s5618_s1 + $0x8e4] ss:$24 sps:$4 sm:$0xff]   ;;  %v4091_v9 = vld [vmem:[%s5618_s1 + $0x8e0] ss:$24 sps:$4 sm:$0xff]   ;;  %v4099_v12 = vld [vmem:[%s5618_s1 + $0x914] ss:$24 sps:$4 sm:$0xff]  }
 0x11b   :  { %2770 = vmatpush1.bf16.msra.mxu1 %v4034_v25  ;;  %v4096_v38 = vld [vmem:[%s5618_s1 + $0x90c] ss:$24 sps:$4 sm:$0xff]   ;;  %v4094_v33 = vld [vmem:[%s5618_s1 + $0x908] ss:$24 sps:$4 sm:$0xff]   ;;  %v4102_v49 = vld [vmem:[%s5618_s1 + $0x93c] ss:$24 sps:$4 sm:$0xff]  }
 0x11c   :  { %2982 = vmatpush1.bf16.msra.mxu0 %v4037_v26  ;;  %2771 = vmatprep.subr.bf16.mxu1 %v4042_v27  ;;  %v4097_v13 = vld [vmem:[%s5618_s1 + $0x910] ss:$24 sps:$4 sm:$0xff]   ;;  %v4105_v14 = vld [vmem:[%s5618_s1 + $0x944] ss:$24 sps:$4 sm:$0xff]   ;;  %v4103_v15 = vld [vmem:[%s5618_s1 + $0x940] ss:$24 sps:$4 sm:$0xff]  }
 0x11d   :  { %2983 = vmatprep.subr.bf16.mxu0 %v4045_v28  ;;  %v4100_v42 = vld [vmem:[%s5618_s1 + $0x938] ss:$24 sps:$4 sm:$0xff]   ;;  %v4108_v16 = vld [vmem:[%s5618_s1 + $0x96c] ss:$24 sps:$4 sm:$0xff]   ;;  %v4106_v17 = vld [vmem:[%s5618_s1 + $0x968] ss:$24 sps:$4 sm:$0xff]  }
 0x11e   :  { %v4109_v48 = vld [vmem:[%s5618_s1 + $0x970] ss:$24 sps:$4 sm:$0xff]   ;;  %v4114_v18 = vld [vmem:[%s5618_s1 + $0x99c] ss:$24 sps:$4 sm:$0xff]   ;;  %v4115_v20 = vld [vmem:[%s5618_s1 + $0x9a0] ss:$24 sps:$4 sm:$0xff]  }
 0x11f   :  { %2772 = vmatpush1.bf16.msra.mxu1 %v4040_v29  ;;  %v4112_v19 = vld [vmem:[%s5618_s1 + $0x998] ss:$24 sps:$4 sm:$0xff]   ;;  %v4120_v55 = vld [vmem:[%s5618_s1 + $0x9cc] ss:$24 sps:$4 sm:$0xff]   ;;  %v4118_v21 = vld [vmem:[%s5618_s1 + $0x9c8] ss:$24 sps:$4 sm:$0xff]  }
 0x120   :  { %2984 = vmatpush1.bf16.msra.mxu0 %v4043_v30  ;;  %2773 = vmatprep.subr.bf16.mxu1 %v4048_v31  ;;  %v4121_v22 = vld [vmem:[%s5618_s1 + $0x9d0] ss:$24 sps:$4 sm:$0xff]   ;;  %v4126_v23 = vld [vmem:[%s5618_s1 + $0x9fc] ss:$24 sps:$4 sm:$0xff]   ;;  %v415_v24 = vld [vmem:[%s5619_s2] sm:$0xff]  ;;  %s4214_s25 = smov [#allocation2]  }
 0x121   :  { %2985 = vmatprep.subr.bf16.mxu0 %v4051_v35  ;;  %v4124_v25 = vld [vmem:[%s5618_s1 + $0x9f8] ss:$24 sps:$4 sm:$0xff]   ;;  %v416_v27 = vld [vmem:[%s5619_s2 + $0x8] sm:$0xff]  ;;  %s3104_s26 = sshll.u32 %s4214_s25, 4  ;;  %s3105_s26 = int_to_ptr.vmem [resolvable:$true] %s3104_s26 }
 0x122   :  { %v4127_v26 = vld [vmem:[%s5618_s1 + $0xa00] ss:$24 sps:$4 sm:$0xff]   ;;  %v4132_v28 = vld [vmem:[%s5618_s1 + $0xa2c] ss:$24 sps:$4 sm:$0xff]   ;;  %v421_v35 = vld [vmem:[%s5619_s2 + $0x30] sm:$0xff]  ;;  %p4195_p1 = scmp.lt.s32.totalorder %s3105_s26, %s3105_s26 }
 0x123   :  { %2774 = vmatpush1.bf16.msra.mxu1 %v4046_v36  ;;  %v4135_v29 = vld [vmem:[%s5618_s1 + $0xa34] ss:$24 sps:$4 sm:$0xff]  }
 0x124   :  { %2986 = vmatpush1.bf16.msra.mxu0 %v4049_v40  ;;  %2775 = vmatprep.subr.bf16.mxu1 %v4054_v41 }
 0x125   :  { %2987 = vmatprep.subr.bf16.mxu0 %v4057_v44  ;;  %v422_v44 = vld [vmem:[%s5619_s2 + $0x38] sm:$0xff] }
 0x127   :  { %2776 = vmatpush1.bf16.msra.mxu1 %v4052_v45 }
 0x128   :  { %2988 = vmatpush1.bf16.msra.mxu0 %v4055_v46  ;;  %2777 = vmatprep.subr.bf16.mxu1 %v4060_v47 }
 0x129   :  { %2989 = vmatprep.subr.bf16.mxu0 %v4063_v53  ;;  %v4130_v53 = vld [vmem:[%s5618_s1 + $0xa28] ss:$24 sps:$4 sm:$0xff]  }
 0x12b   :  { %2778 = vmatpush1.bf16.msra.mxu1 %v4058_v54  ;;  %v4133_v54 = vld [vmem:[%s5618_s1 + $0xa30] ss:$24 sps:$4 sm:$0xff]  }
 0x12c   :  { %2990 = vmatpush1.bf16.msra.mxu0 %v4061_v56  ;;  %2779 = vmatprep.subr.bf16.mxu1 %v4066_v57 }
 0x12d   :  { %2991 = vmatprep.subr.bf16.mxu0 %v4069_v58 }
 0x12f   :  { %2780 = vmatpush1.bf16.msra.mxu1 %v4064_v59 }
 0x130   :  { %2992 = vmatpush1.bf16.msra.mxu0 %v4067_v60  ;;  %2781 = vmatprep.subr.bf16.mxu1 %v4072_v61  ;;  %v4138_v60 = vld [vmem:[%s5618_s1 + $0xa5c] ss:$24 sps:$4 sm:$0xff]  }
 0x131   :  { %2993 = vmatprep.subr.bf16.mxu0 %v4075_v62  ;;  %v4141_v61 = vld [vmem:[%s5618_s1 + $0xa64] ss:$24 sps:$4 sm:$0xff]  }
 0x133   :  { %2782 = vmatpush1.bf16.msra.mxu1 %v4070_v63 }
 0x134   :  { %2994 = vmatpush1.bf16.msra.mxu0 %v4073_v0  ;;  %2783 = vmatprep.subr.bf16.mxu1 %v4078_v52 }
 0x135   :  { %2995 = vmatprep.subr.bf16.mxu0 %v4081_v1  ;;  %v427_v1 = vld [vmem:[%s5619_s2 + $0x60] sm:$0xff] }
 0x137   :  { %2784 = vmatpush1.bf16.msra.mxu1 %v4076_v2  ;;  %v4136_v2 = vld [vmem:[%s5618_s1 + $0xa58] ss:$24 sps:$4 sm:$0xff]  }
 0x138   :  { %2996 = vmatpush1.bf16.msra.mxu0 %v4079_v10  ;;  %2785 = vmatprep.subr.bf16.mxu1 %v4084_v3  ;;  %v4139_v10 = vld [vmem:[%s5618_s1 + $0xa60] ss:$24 sps:$4 sm:$0xff]   ;;  %v428_v3 = vld [vmem:[%s5619_s2 + $0x68] sm:$0xff] }
 0x139   :  { %2997 = vmatprep.subr.bf16.mxu0 %v4087_v4  ;;  %v4144_v4 = vld [vmem:[%s5618_s1 + $0xa8c] ss:$24 sps:$4 sm:$0xff]  }
 0x13b   :  { %2786 = vmatpush1.bf16.msra.mxu1 %v4082_v5  ;;  %v4147_v5 = vld [vmem:[%s5618_s1 + $0xa94] ss:$24 sps:$4 sm:$0xff]  }
 0x13c   :  { %2998 = vmatpush1.bf16.msra.mxu0 %v4085_v32  ;;  %2787 = vmatprep.subr.bf16.mxu1 %v4090_v6 }
 0x13d   :  { %2999 = vmatprep.subr.bf16.mxu0 %v4093_v7  ;;  %v433_v7 = vld [vmem:[%s5619_s2 + $0x90] sm:$0xff] }
 0x13f   :  { %2788 = vmatpush1.bf16.msra.mxu1 %v4088_v8 }
 0x140   :  { %3000 = vmatpush1.bf16.msra.mxu0 %v4091_v9  ;;  %2810 = vmatprep.subr.bf16.mxu1 %v4096_v38 }
 0x141   :  { %3022 = vmatprep.subr.bf16.mxu0 %v4099_v12  ;;  %v434_v12 = vld [vmem:[%s5619_s2 + $0x98] sm:$0xff] }
 0x142   :  { %2790 = vmatmul.mubr.bf16.vlgmr.msra.gmra.mrb[8].mxu1 %v4461_v11 }
 0x143   :  { %3002 = vmatmul.mubr.bf16.vlgmr.msra.gmra.mrb[8].mxu0 %v4461_v11  ;;  %2811 = vmatpush1.bf16.msra.mxu1 %v4094_v33  ;;  %v4111_v11 = vld [vmem:[%s5618_s1 + $0x974] ss:$24 sps:$4 sm:$0xff]  }
 0x144   :  { %3023 = vmatpush1.bf16.msra.mxu0 %v4097_v13  ;;  %2812 = vmatprep.subr.bf16.mxu1 %v4102_v49 }
 0x145   :  { %3024 = vmatprep.subr.bf16.mxu0 %v4105_v14  ;;  %2799 = vmatprep.mubr.bf16.mxu1 %v4539_v37  ;;  %v4142_v14 = vld [vmem:[%s5618_s1 + $0xa88] ss:$24 sps:$4 sm:$0xff]  }
 0x146   :  { %3011 = vmatprep.mubr.bf16.mxu0 %v4539_v37  ;;  %v4117_v37 = vld [vmem:[%s5618_s1 + $0x9a4] ss:$24 sps:$4 sm:$0xff]  }
 0x147   :  { %2813 = vmatpush1.bf16.msra.mxu1 %v4100_v42  ;;  %v4145_v42 = vld [vmem:[%s5618_s1 + $0xa90] ss:$24 sps:$4 sm:$0xff]  }
 0x148   :  { %3025 = vmatpush1.bf16.msra.mxu0 %v4103_v15  ;;  %2814 = vmatprep.subr.bf16.mxu1 %v4108_v16 }
 0x149   :  { %3026 = vmatprep.subr.bf16.mxu0 %v4111_v11 }
 0x14a   :  { %2800 = vmatmul.mubr.bf16.gmra.mrb[12].mxu1 %v4543_v39 }
 0x14b   :  { %3012 = vmatmul.mubr.bf16.gmra.mrb[12].mxu0 %v4543_v39  ;;  %2815 = vmatpush1.bf16.msra.mxu1 %v4106_v17  ;;  %v4123_v39 = vld [vmem:[%s5618_s1 + $0x9d4] ss:$24 sps:$4 sm:$0xff]  }
 0x14c   :  { %3027 = vmatpush1.bf16.msra.mxu0 %v4109_v48  ;;  %2816 = vmatprep.subr.bf16.mxu1 %v4114_v18  ;;  %v4150_v48 = vld [vmem:[%s5618_s1 + $0xabc] ss:$24 sps:$4 sm:$0xff]  }
 0x14d   :  { %3028 = vmatprep.subr.bf16.mxu0 %v4117_v37  ;;  %2842 = vmatprep.mubr.bf16.mxu1 %v4593_v51  ;;  %v4153_v18 = vld [vmem:[%s5618_s1 + $0xac4] ss:$24 sps:$4 sm:$0xff]  }
 0x14e   :  { %3054 = vmatprep.mubr.bf16.mxu0 %v4593_v51  ;;  %v4129_v51 = vld [vmem:[%s5618_s1 + $0xa04] ss:$24 sps:$4 sm:$0xff]  }
 0x14f   :  { %2817 = vmatpush1.bf16.msra.mxu1 %v4112_v19 }
 0x150   :  { %3029 = vmatpush1.bf16.msra.mxu0 %v4115_v20  ;;  %2818 = vmatprep.subr.bf16.mxu1 %v4120_v55 }
 0x151   :  { %3030 = vmatprep.subr.bf16.mxu0 %v4123_v39  ;;  %v4148_v39 = vld [vmem:[%s5618_s1 + $0xab8] ss:$24 sps:$4 sm:$0xff]  }
 0x153   :  { %2819 = vmatpush1.bf16.msra.mxu1 %v4118_v21  ;;  %v4151_v21 = vld [vmem:[%s5618_s1 + $0xac0] ss:$24 sps:$4 sm:$0xff]  }
 0x154   :  { %3031 = vmatpush1.bf16.msra.mxu0 %v4121_v22  ;;  %2820 = vmatprep.subr.bf16.mxu1 %v4126_v23  ;;  %v4156_v22 = vld [vmem:[%s5618_s1 + $0xaec] ss:$24 sps:$4 sm:$0xff]  }
 0x155   :  { %3032 = vmatprep.subr.bf16.mxu0 %v4129_v51  ;;  %v2526_v30 = vpop.f32.mrb[0].mxu1  ;;  %v4159_v23 = vld [vmem:[%s5618_s1 + $0xaf4] ss:$24 sps:$4 sm:$0xff]   ;;  %v4154_v51 = vld [vmem:[%s5618_s1 + $0xae8] ss:$24 sps:$4 sm:$0xff]  }
 0x156   :  { %v2632_v31 = vpop.f32.mrb[0].mxu0  ;;  %v3515_v36 = vadd.f32 %v2526_v30, %v415_v24  ;;  %v2528_v40 = vpop.f32.mrb[1].mxu1  ;;  %v4157_v24 = vld [vmem:[%s5618_s1 + $0xaf0] ss:$24 sps:$4 sm:$0xff]   ;;  %v4171_v30 = vld [vmem:[%s5618_s1 + $0xb54] ss:$24 sps:$4 sm:$0xff]  }
 0x157   :  { %v2634_v41 = vpop.f32.mrb[1].mxu0  ;;  %v3517_v45 = vadd.f32 %v2528_v40, %v416_v27  ;;  %v2530_v46 = vpop.f32.mrb[2].mxu1  ;;  %2821 = vmatpush1.bf16.msra.mxu1 %v4124_v25  ;;  %v4162_v25 = vld [vmem:[%s5618_s1 + $0xb1c] ss:$24 sps:$4 sm:$0xff]   ;;  %v4160_v27 = vld [vmem:[%s5618_s1 + $0xb18] ss:$24 sps:$4 sm:$0xff]  }
 0x158   :  { %v2636_v47 = vpop.f32.mrb[2].mxu0  ;;  %3033 = vmatpush1.bf16.msra.mxu0 %v4127_v26  ;;  %v3516_v56 = vadd.f32 %v3515_v36, %v2632_v31  ;;  %v3519_v57 = vadd.f32 %v2530_v46, %v421_v35  ;;  %v2532_v58 = vpop.f32.mrb[3].mxu1  ;;  %2822 = vmatprep.subr.bf16.mxu1 %v4132_v28  ;;  %v4165_v26 = vld [vmem:[%s5618_s1 + $0xb24] ss:$24 sps:$4 sm:$0xff]   ;;  %v4163_v28 = vld [vmem:[%s5618_s1 + $0xb20] ss:$24 sps:$4 sm:$0xff]  }
 0x159   :  { %v2638_v59 = vpop.f32.mrb[3].mxu0  ;;  %3034 = vmatprep.subr.bf16.mxu0 %v4135_v29  ;;  %v3518_v62 = vadd.f32 %v3517_v45, %v2634_v41  ;;  %v3521_v63 = vadd.f32 %v2532_v58, %v422_v44  ;;  %v4168_v29 = vld [vmem:[%s5618_s1 + $0xb4c] ss:$24 sps:$4 sm:$0xff]   ;;  %v4166_v31 = vld [vmem:[%s5618_s1 + $0xb48] ss:$24 sps:$4 sm:$0xff]  }
 0x15a   :  { %3075 = vst [vmem:[#allocation2] sm:$0xff] %v3516_v56  ;;  %v3520_v0 = vadd.f32 %v3519_v57, %v2636_v47  ;;  %v4169_v35 = vld [vmem:[%s5618_s1 + $0xb50] ss:$24 sps:$4 sm:$0xff]   ;;  %v4174_v36 = vld [vmem:[%s5618_s1 + $0xb7c] ss:$24 sps:$4 sm:$0xff]  }
 0x15b   :  { %3076 = vst [vmem:[#allocation2 + $0x8] sm:$0xff] %v3518_v62  ;;  %v3522_v52 = vadd.f32 %v3521_v63, %v2638_v59  ;;  %2823 = vmatpush1.bf16.msra.mxu1 %v4130_v53  ;;  %v4177_v40 = vld [vmem:[%s5618_s1 + $0xb84] ss:$24 sps:$4 sm:$0xff]   ;;  %v4172_v41 = vld [vmem:[%s5618_s1 + $0xb78] ss:$24 sps:$4 sm:$0xff]  }
 0x15c   :  { %3035 = vmatpush1.bf16.msra.mxu0 %v4133_v54  ;;  %3081 = vst [vmem:[#allocation2 + $0x30] sm:$0xff] %v3520_v0  ;;  %2824 = vmatprep.subr.bf16.mxu1 %v4138_v60  ;;  %v4175_v44 = vld [vmem:[%s5618_s1 + $0xb80] ss:$24 sps:$4 sm:$0xff]   ;;  %v4180_v45 = vld [vmem:[%s5618_s1 + $0xbac] ss:$24 sps:$4 sm:$0xff]   ;;  %v417_v59 = vld [vmem:[%s5619_s2 + $0x10] sm:$0xff] }
 0x15d   :  { %3036 = vmatprep.subr.bf16.mxu0 %v4141_v61  ;;  %3082 = vst [vmem:[#allocation2 + $0x38] sm:$0xff] %v3522_v52  ;;  %v2536_v32 = vpop.f32.mrb[4].mxu1  ;;  %v4183_v46 = vld [vmem:[%s5618_s1 + $0xbb4] ss:$24 sps:$4 sm:$0xff]   ;;  %v4178_v47 = vld [vmem:[%s5618_s1 + $0xba8] ss:$24 sps:$4 sm:$0xff]  }
 0x15e   :  { %v2642_v6 = vpop.f32.mrb[4].mxu0  ;;  %v3523_v8 = vadd.f32 %v2536_v32, %v427_v1  ;;  %v2538_v9 = vpop.f32.mrb[5].mxu1  ;;  %v4181_v53 = vld [vmem:[%s5618_s1 + $0xbb0] ss:$24 sps:$4 sm:$0xff]   ;;  %v4186_v54 = vld [vmem:[%s5618_s1 + $0xbdc] ss:$24 sps:$4 sm:$0xff]  }
 0x15f   :  { %v2644_v38 = vpop.f32.mrb[5].mxu0  ;;  %v3525_v33 = vadd.f32 %v2538_v9, %v428_v3  ;;  %v2540_v13 = vpop.f32.mrb[6].mxu1  ;;  %2825 = vmatpush1.bf16.msra.mxu1 %v4136_v2  ;;  %v4189_v56 = vld [vmem:[%s5618_s1 + $0xbe4] ss:$24 sps:$4 sm:$0xff]   ;;  %v4184_v57 = vld [vmem:[%s5618_s1 + $0xbd8] ss:$24 sps:$4 sm:$0xff]  }
 0x160   :  { %v2646_v49 = vpop.f32.mrb[6].mxu0  ;;  %3037 = vmatpush1.bf16.msra.mxu0 %v4139_v10  ;;  %v3524_v15 = vadd.f32 %v3523_v8, %v2642_v6  ;;  %v3527_v16 = vadd.f32 %v2540_v13, %v433_v7  ;;  %v2542_v11 = vpop.f32.mrb[7].mxu1  ;;  %2826 = vmatprep.subr.bf16.mxu1 %v4144_v4  ;;  %v4187_v58 = vld [vmem:[%s5618_s1 + $0xbe0] ss:$24 sps:$4 sm:$0xff]   ;;  %v425_v63 = vld [vmem:[%s5619_s2 + $0x50] sm:$0xff]  ;;  %v424_v10 = vld [vmem:[%s5619_s2 + $0x48] sm:$0xff] }
 0x161   :  { %v2648_v17 = vpop.f32.mrb[7].mxu0  ;;  %3038 = vmatprep.subr.bf16.mxu0 %v4147_v5  ;;  %v3526_v37 = vadd.f32 %v3525_v33, %v2644_v38  ;;  %v3529_v19 = vadd.f32 %v2542_v11, %v434_v12  ;;  %v419_v60 = vld [vmem:[%s5619_s2 + $0x20] sm:$0xff]  ;;  %v426_v3 = vld [vmem:[%s5619_s2 + $0x58] sm:$0xff]  ;;  %v429_v13 = vld [vmem:[%s5619_s2 + $0x70] sm:$0xff] }
 0x162   :  { %3087 = vst [vmem:[#allocation2 + $0x60] sm:$0xff] %v3524_v15  ;;  %v3528_v20 = vadd.f32 %v3527_v16, %v2646_v49  ;;  %v431_v49 = vld [vmem:[%s5619_s2 + $0x80] sm:$0xff] }
 0x163   :  { %3088 = vst [vmem:[#allocation2 + $0x68] sm:$0xff] %v3526_v37  ;;  %v3530_v55 = vadd.f32 %v3529_v19, %v2648_v17  ;;  %2827 = vmatpush1.bf16.msra.mxu1 %v4142_v14  ;;  %v430_v14 = vld [vmem:[%s5619_s2 + $0x78] sm:$0xff]  ;;  %v435_v11 = vld [vmem:[%s5619_s2 + $0xa0] sm:$0xff]  ;;  %v437_v17 = vld [vmem:[%s5619_s2 + $0xb0] sm:$0xff] }
 0x164   :  { %3039 = vmatpush1.bf16.msra.mxu0 %v4145_v42  ;;  %3093 = vst [vmem:[#allocation2 + $0x90] sm:$0xff] %v3528_v20  ;;  %2828 = vmatprep.subr.bf16.mxu1 %v4150_v48  ;;  %v432_v42 = vld [vmem:[%s5619_s2 + $0x88] sm:$0xff] }
 0x165   :  { %3040 = vmatprep.subr.bf16.mxu0 %v4153_v18  ;;  %3094 = vst [vmem:[#allocation2 + $0x98] sm:$0xff] %v3530_v55  ;;  %v436_v20 = vld [vmem:[%s5619_s2 + $0xa8] sm:$0xff]  ;;  %v438_v55 = vld [vmem:[%s5619_s2 + $0xb8] sm:$0xff] }
 0x167   :  { %2829 = vmatpush1.bf16.msra.mxu1 %v4148_v39 }
 0x168   :  { %3041 = vmatpush1.bf16.msra.mxu0 %v4151_v21  ;;  %2830 = vmatprep.subr.bf16.mxu1 %v4156_v22 }
 0x169   :  { %3042 = vmatprep.subr.bf16.mxu0 %v4159_v23 }
 0x16b   :  { %2831 = vmatpush1.bf16.msra.mxu1 %v4154_v51 }
 0x16c   :  { %3043 = vmatpush1.bf16.msra.mxu0 %v4157_v24  ;;  %2832 = vmatprep.subr.bf16.mxu1 %v4162_v25 }
 0x16d   :  { %3044 = vmatprep.subr.bf16.mxu0 %v4165_v26 }
 0x16f   :  { %2833 = vmatpush1.bf16.msra.mxu1 %v4160_v27 }
 0x170   :  { %3045 = vmatpush1.bf16.msra.mxu0 %v4163_v28  ;;  %2834 = vmatprep.subr.bf16.mxu1 %v4168_v29 }
 0x171   :  { %3046 = vmatprep.subr.bf16.mxu0 %v4171_v30 }
 0x173   :  { %2835 = vmatpush1.bf16.msra.mxu1 %v4166_v31 }
 0x174   :  { %3047 = vmatpush1.bf16.msra.mxu0 %v4169_v35  ;;  %2836 = vmatprep.subr.bf16.mxu1 %v4174_v36 }
 0x175   :  { %3048 = vmatprep.subr.bf16.mxu0 %v4177_v40 }
 0x177   :  { %2837 = vmatpush1.bf16.msra.mxu1 %v4172_v41 }
 0x178   :  { %3049 = vmatpush1.bf16.msra.mxu0 %v4175_v44  ;;  %2838 = vmatprep.subr.bf16.mxu1 %v4180_v45 }
 0x179   :  { %3050 = vmatprep.subr.bf16.mxu0 %v4183_v46 }
 0x17b   :  { %2839 = vmatpush1.bf16.msra.mxu1 %v4178_v47 }
 0x17c   :  { %3051 = vmatpush1.bf16.msra.mxu0 %v4181_v53  ;;  %2840 = vmatprep.subr.bf16.mxu1 %v4186_v54 }
 0x17d   :  { %3052 = vmatprep.subr.bf16.mxu0 %v4189_v56 }
 0x17f   :  { %2841 = vmatpush1.bf16.msra.mxu1 %v4184_v57 }
 0x180   :  { %3053 = vmatpush1.bf16.msra.mxu0 %v4187_v58 }
 0x182   :  { %2843 = vmatmul.mubr.bf16.vlgmr.msra.gmra.mrb[8].mxu1 %v4723_v34 }
 0x183   :  { %3055 = vmatmul.mubr.bf16.vlgmr.msra.gmra.mrb[8].mxu0 %v4723_v34  ;;  %2852 = vmatprep.mubr.bf16.mxu1 %v4739_v43  ;;  %v418_v34 = vld [vmem:[%s5619_s2 + $0x18] sm:$0xff] }
 0x184   :  { %3064 = vmatprep.mubr.bf16.mxu0 %v4739_v43  ;;  %v420_v43 = vld [vmem:[%s5619_s2 + $0x28] sm:$0xff] }
 0x18a   :  { %2853 = vmatmul.mubr.bf16.gmra.mrb[12].mxu1 %v4759_v50 }
 0x18b   :  { %3065 = vmatmul.mubr.bf16.gmra.mrb[12].mxu0 %v4759_v50  ;;  %v423_v50 = vld [vmem:[%s5619_s2 + $0x40] sm:$0xff]  ;;  %s4190_s2 = scalar_lea.vmem %s3105_s26, 3072 }
 0x18c   :  { %p4191_p0 = scmp.ne.s32.totalorder %s3105_s26, %s4190_s2  ;;  %p4196_p2 = scmp.lt.s32.totalorder %s4190_s2, %s4190_s2 }
 0x18e   :  { %p4197_p3 = por %p4196_p2, %p4195_p1 }
 0x190   :  { %p4198_p4 = pnand %p4197_p3, %p4191_p0 }
 0x255   :  { %v2844_v61 = vpop.f32.mrb[8].mxu1 }
 0x256   :  { %v3056_v62 = vpop.f32.mrb[8].mxu0  ;;  %v3531_v0 = vadd.f32 %v2844_v61, %v417_v59  ;;  %v2846_v1 = vpop.f32.mrb[9].mxu1 }
 0x257   :  { %v3539_v52 = vadd.f32 %v3056_v62, %v419_v60  ;;  %v3058_v2 = vpop.f32.mrb[9].mxu0  ;;  %v3532_v4 = vadd.f32 %v2846_v1, %v418_v34  ;;  %v2848_v32 = vpop.f32.mrb[10].mxu1 }
 0x258   :  { %v3540_v5 = vadd.f32 %v3058_v2, %v420_v43  ;;  %v3060_v6 = vpop.f32.mrb[10].mxu0  ;;  %3077 = vst [vmem:[#allocation2 + $0x10] sm:$0xff] %v3531_v0  ;;  %v3533_v7 = vadd.f32 %v2848_v32, %v423_v50  ;;  %v2850_v9 = vpop.f32.mrb[11].mxu1 }
 0x259   :  { %3079 = vst [vmem:[#allocation2 + $0x20] sm:$0xff] %v3539_v52  ;;  %v3541_v8 = vadd.f32 %v3060_v6, %v425_v63  ;;  %v3062_v38 = vpop.f32.mrb[11].mxu0  ;;  %3078 = vst [vmem:[#allocation2 + $0x18] sm:$0xff] %v3532_v4  ;;  %v3534_v12 = vadd.f32 %v2850_v9, %v424_v10 }
 0x25a   :  { %3080 = vst [vmem:[#allocation2 + $0x28] sm:$0xff] %v3540_v5  ;;  %v3542_v33 = vadd.f32 %v3062_v38, %v426_v3  ;;  %3083 = vst [vmem:[#allocation2 + $0x40] sm:$0xff] %v3533_v7 }
 0x25b   :  { %3085 = vst [vmem:[#allocation2 + $0x50] sm:$0xff] %v3541_v8  ;;  %3084 = vst [vmem:[#allocation2 + $0x48] sm:$0xff] %v3534_v12 }
 0x25c   :  { %3086 = vst [vmem:[#allocation2 + $0x58] sm:$0xff] %v3542_v33 }
 0x25d   :  { %v2854_v15 = vpop.f32.mrb[12].mxu1 }
 0x25e   :  { %v3066_v16 = vpop.f32.mrb[12].mxu0  ;;  %v3535_v48 = vadd.f32 %v2854_v15, %v429_v13  ;;  %v2856_v37 = vpop.f32.mrb[13].mxu1 }
 0x25f   :  { %v3543_v18 = vadd.f32 %v3066_v16, %v431_v49  ;;  %v3068_v19 = vpop.f32.mrb[13].mxu0  ;;  %v3536_v39 = vadd.f32 %v2856_v37, %v430_v14  ;;  %v2858_v22 = vpop.f32.mrb[14].mxu1 }
 0x260   :  { %v3544_v21 = vadd.f32 %v3068_v19, %v432_v42  ;;  %v3070_v23 = vpop.f32.mrb[14].mxu0  ;;  %3089 = vst [vmem:[#allocation2 + $0x70] sm:$0xff] %v3535_v48  ;;  %v3537_v51 = vadd.f32 %v2858_v22, %v435_v11  ;;  %v2860_v25 = vpop.f32.mrb[15].mxu1 }
 0x261   :  { %3091 = vst [vmem:[#allocation2 + $0x80] sm:$0xff] %v3543_v18  ;;  %v3545_v24 = vadd.f32 %v3070_v23, %v437_v17  ;;  %v3072_v26 = vpop.f32.mrb[15].mxu0  ;;  %3090 = vst [vmem:[#allocation2 + $0x78] sm:$0xff] %v3536_v39  ;;  %v3538_v27 = vadd.f32 %v2860_v25, %v436_v20 }
 0x262   :  { %3092 = vst [vmem:[#allocation2 + $0x88] sm:$0xff] %v3544_v21  ;;  %v3546_v28 = vadd.f32 %v3072_v26, %v438_v55  ;;  %3095 = vst [vmem:[#allocation2 + $0xa0] sm:$0xff] %v3537_v51 }
 0x263   :  { %3097 = vst [vmem:[#allocation2 + $0xb0] sm:$0xff] %v3545_v24  ;;  %3096 = vst [vmem:[#allocation2 + $0xa8] sm:$0xff] %v3538_v27 }
 0x264   :  { %3098 = vst [vmem:[#allocation2 + $0xb8] sm:$0xff] %v3546_v28 }
 0x265   :  { %4201 = shalt.err (!%p4198_p4)
}
 0x266   :  { %s4202_s5 = scalar_lea.hbm %s5620_s3, 3072 }
 0x267   :  { %p4203_p5 = scmp.ne.s32.totalorder %s5620_s3, %s4202_s5  ;;  %p4206_p6 = scmp.lt.u32.totalorder %s4202_s5, %s5620_s3 }
 0x269   :  { %p4208_p7 = pnand %p4206_p6, %p4203_p5 }
 0x26b   :  { %4211 = shalt.err (!%p4208_p7)
}
 0x26c   :  { %s4215_s10 = smov 768   ;;  %s4216_s11 = smov 48  }
 0x26d   :  { %3110 = dma.vmem_to_hbm [thread:$0]  %s3105_s26, 3072, %s5620_s3, [#allocation3], %s4215_s10, %s4215_s10, %s4216_s11  }
 0x26e   :  { %4212 = dma.done.wait [#allocation3], 3072  }
 0x26f   :  { %4213 = vsyncadd [#allocation3], 4294964224 }
 0x270   :  { %3114 = vsyncpa [#allocation3], 1 }

</bundles_post_ra>
